<compile_context>
chip_gen: v7x
topology: tpu7x:2x2x1
jax: 0.10.0
libtpu: 0.0.40
codegen_flags: <defaults>
</compile_context>

<pallas_src>
import math

import jax
import jax.numpy as jnp
from jax import lax
from jax.experimental import pallas as pl
from jax.experimental.pallas import tpu as pltpu


# ---------------------------------------------------------------------------
# Kernels
# ---------------------------------------------------------------------------

# Contract last dim of LHS with first (sublane) dim of RHS -> plain MXU matmul,
# no operand transposes.
_DN = (((1,), (0,)), ((), ()))


def _mlp_kernel_resident(x_ref, wgu_ref, wd_ref, o_ref):
    """Single-I-step kernel: the full (pre-transposed) weights are VMEM resident.

    x_ref  : (tm, H)     token tile
    wgu_ref: (2, H, I)   fused [gate; up] weights, (in, out) layout
    wd_ref : (I, H)      down weights, (in, out) layout
    o_ref  : (tm, H)     output tile
    """
    x = x_ref[...]
    if x.dtype != wgu_ref.dtype:
        x = x.astype(wgu_ref.dtype)          # bf16 path: cast activations in-kernel
    gate = lax.dot_general(x, wgu_ref[0], _DN, preferred_element_type=jnp.float32)
    up = lax.dot_general(x, wgu_ref[1], _DN, preferred_element_type=jnp.float32)
    hidden = (gate * jax.nn.sigmoid(gate)) * up          # SwiGLU in f32
    out = lax.dot_general(hidden.astype(wd_ref.dtype), wd_ref[...], _DN,
                          preferred_element_type=jnp.float32)
    o_ref[...] = out.astype(o_ref.dtype)


def _mlp_kernel_acc(x_ref, wgu_ref, wd_ref, o_ref, acc_ref):
    """Multi-I-step kernel: weights streamed as (.., ti) column tiles; partial
    down-projections accumulated into an f32 (tm, H) VMEM scratch.

    x_ref  : (tm, H)       token tile (resident across the I axis)
    wgu_ref: (2, H, ti)    fused [gate; up] weight tile
    wd_ref : (ti, H)       down weight tile
    o_ref  : (tm, H)       output tile (written on the last I step)
    acc_ref: (tm, H) f32   accumulator scratch
    """
    j = pl.program_id(1)

    @pl.when(j == 0)
    def _():
        acc_ref[...] = jnp.zeros_like(acc_ref)

    x = x_ref[...]
    if x.dtype != wgu_ref.dtype:
        x = x.astype(wgu_ref.dtype)
    gate = lax.dot_general(x, wgu_ref[0], _DN, preferred_element_type=jnp.float32)
    up = lax.dot_general(x, wgu_ref[1], _DN, preferred_element_type=jnp.float32)
    hidden = (gate * jax.nn.sigmoid(gate)) * up
    acc_ref[...] += lax.dot_general(hidden.astype(wd_ref.dtype), wd_ref[...], _DN,
                                    preferred_element_type=jnp.float32)

    @pl.when(j == pl.num_programs(1) - 1)
    def _():
        o_ref[...] = acc_ref[...].astype(o_ref.dtype)


# ---------------------------------------------------------------------------
# Tile / VMEM sizing helpers
# ---------------------------------------------------------------------------

def _round_up(v, m):
    return ((v + m - 1) // m) * m


def _vmem_capacity_bytes():
    try:
        return int(pltpu.get_tpu_info().vmem_capacity_bytes)
    except Exception:
        return 64 * 1024 * 1024  # conservative (v7x per-core VMEM)


def _vmem_budget_bytes():
    cap = _vmem_capacity_bytes()
    # Leave headroom for Mosaic internal scratch; never ask for more than ~100MiB
    # even on 128 MiB parts (v5e/v6e), never less than 32 MiB.
    return int(max(min(cap - 16 * 1024 * 1024, 100 * 1024 * 1024),
                   32 * 1024 * 1024))


def _footprint_bytes(tm, ti, H, xb, wb, ob, multi_j):
    """Per-step VMEM footprint: double-buffered tiles + f32 temporaries."""
    f = 2 * tm * H * xb             # x tile
    f += 2 * 2 * H * ti * wb        # fused gate+up weight tile (2, H, ti)
    f += 2 * ti * H * wb            # down weight tile
    f += 2 * tm * H * ob            # output tile
    f += 4 * tm * ti * 4            # gate/up/hidden f32 temporaries (+ cast copy)
    if multi_j:
        f += tm * H * 4             # f32 accumulator scratch
    return f


def _choose_tm(M, target):
    """Token tile: multiple of 8, prefer one that divides M (no jnp.pad)."""
    if M <= target:
        return max(8, _round_up(M, 8))
    t = max(8, (target // 8) * 8)
    lo = max(8, t // 2)
    for cand in range(t, lo - 1, -8):
        if M % cand == 0:
            return cand
    return t  # fall back to padding


def _i_tile_candidates(I):
    """Multiples of 128 dividing I (largest first), plus I itself (full dim)."""
    cands = set()
    t = (I // 128) * 128
    for c in range(t, 0, -128):
        if I % c == 0:
            cands.add(c)
    cands.add(I)
    return sorted(cands, reverse=True)


def _fit_tiles(tm, H, I, xb, wb, ob, budget):
    """Largest I tile (resident-weight path preferred) that fits the budget;
    shrink tm if even the smallest I tile does not fit."""
    i_cands = _i_tile_candidates(I)
    while True:
        for ti in i_cands:
            if _footprint_bytes(tm, ti, H, xb, wb, ob, multi_j=(ti != I)) <= budget:
                return tm, ti
        if tm > 64:
            tm = max(64, _round_up(tm // 2, 8))
        else:
            # TODO(synk): pathologically large H/I -- fall through with the
            # smallest tiles and a raised VMEM limit (may spill).
            return tm, i_cands[-1]


# ---------------------------------------------------------------------------
# Wrappers
# ---------------------------------------------------------------------------

def prepare_lfm2_mlp_weights(w_gate, w_up, w_down, dtype=None):
    """One-time parameter prep (do this at weight-load time, not per call).

    Inputs in PyTorch (out, in) layout: w_gate/w_up (I, H), w_down (H, I).
    Returns:
      w_gu: (2, H, I)  fused, pre-transposed gate/up weights
      w_dn: (I, H)     pre-transposed down weights
    """
    I, H = w_gate.shape
    assert w_up.shape == (I, H) and w_down.shape == (H, I)
    w_gu = jnp.stack([w_gate.T, w_up.T], axis=0)     # (2, H, I)
    w_dn = w_down.T                                  # (I, H)
    if dtype is not None:
        w_gu = w_gu.astype(dtype)
        w_dn = w_dn.astype(dtype)
    return w_gu, w_dn


def lfm2_mlp_prepped(x, w_gu, w_dn):
    """SwiGLU MLP forward with pre-prepared weights.  x: (B, T, H)."""
    B, T, H = x.shape
    two, H2, I = w_gu.shape
    assert two == 2 and H2 == H and w_dn.shape == (I, H)

    M = B * T
    xb = jnp.dtype(x.dtype).itemsize
    wb = jnp.dtype(w_gu.dtype).itemsize
    ob = xb

    budget = _vmem_budget_bytes()

    # Arithmetic intensity of the weight stream is ~2*tm/wb flop/B, so bf16
    # weights want tm ~ 512; f32 weights are bandwidth-bound regardless.
    target_tm = 512 if wb <= 2 else 256
    tm = _choose_tm(M, target_tm)

    # v7x megacore: keep >= 2 token tiles so both TensorCores get work.
    if pl.cdiv(M, tm) == 1 and M > 8:
        tm = _round_up(pl.cdiv(M, 2), 8)

    tm, ti = _fit_tiles(tm, H, I, xb, wb, ob, budget)
    n_i = pl.cdiv(M, tm)
    n_j = 1 if ti == I else I // ti

    x2d = x.reshape(M, H)
    M_pad = n_i * tm
    if M_pad != M:
        # Fallback only; padded rows are row-independent garbage-in/garbage-out
        # and are sliced off below.
        x2d = jnp.pad(x2d, ((0, M_pad - M), (0, 0)))

    footprint = _footprint_bytes(tm, ti, H, xb, wb, ob, multi_j=(n_j > 1))
    vmem_limit = int(min(_vmem_capacity_bytes(),
                         max(int(footprint * 1.25), 32 * 1024 * 1024)))

    if n_j == 1:
        kernel = _mlp_kernel_resident
        scratch_shapes = []
    else:
        kernel = _mlp_kernel_acc
        scratch_shapes = [pltpu.VMEM((tm, H), jnp.float32)]

    out = pl.pallas_call(
        kernel,
        out_shape=jax.ShapeDtypeStruct((M_pad, H), x.dtype),
        grid_spec=pltpu.PrefetchScalarGridSpec(
            num_scalar_prefetch=0,
            grid=(n_i, n_j),
            in_specs=[
                pl.BlockSpec((tm, H), lambda i, j: (i, 0)),        # x tile
                pl.BlockSpec((2, H, ti), lambda i, j: (0, 0, j)),  # fused gate/up
                pl.BlockSpec((ti, H), lambda i, j: (j, 0)),        # down weights
            ],
            out_specs=pl.BlockSpec((tm, H), lambda i, j: (i, 0)),
            scratch_shapes=scratch_shapes,
        ),
        compiler_params=pltpu.CompilerParams(
            dimension_semantics=("parallel", "arbitrary"),
            vmem_limit_bytes=vmem_limit,
        ),
    )(x2d, w_gu, w_dn)

    if M_pad != M:
        out = out[:M]
    return out.reshape(B, T, H)


def lfm2_mlp_pallas(x, w_gate, w_up, w_down, *, weight_dtype=None):
    """Convenience wrapper taking PyTorch-layout weights (transposes/fuses them
    on the fly; prefer prepare_lfm2_mlp_weights + lfm2_mlp_prepped in real use)."""
    w_gu, w_dn = prepare_lfm2_mlp_weights(w_gate, w_up, w_down, dtype=weight_dtype)
    return lfm2_mlp_prepped(x, w_gu, w_dn)


def lfm2_mlp_reference(x, w_gate, w_up, w_down):
    """Pure-JAX reference matching the PyTorch forward exactly."""
    g = jnp.einsum("bth,ih->bti", x, w_gate)
    u = jnp.einsum("bth,ih->bti", x, w_up)
    h = (g * jax.nn.sigmoid(g)) * u
    return jnp.einsum("bti,hi->bth", h, w_down)


# ---------------------------------------------------------------------------
# Demo / self-test
# ---------------------------------------------------------------------------

if __name__ == "__main__":
    # Small, TPU-tile-friendly shapes consistent with the module
    # (hidden_size -> H, intermediate_size -> I, both multiples of 128).
    B, T = 2, 16
    H, I = 256, 512

    key = jax.random.PRNGKey(0)
    kx, kg, ku, kd = jax.random.split(key, 4)

    x = jax.random.normal(kx, (B, T, H), dtype=jnp.float32)

    # Deterministic init mimicking nn.Linear default: U(-1/sqrt(fan_in), +).
    bound_h = 1.0 / math.sqrt(H)
    bound_i = 1.0 / math.sqrt(I)
    w_gate = jax.random.uniform(kg, (I, H), jnp.float32, -bound_h, bound_h)
    w_up = jax.random.uniform(ku, (I, H), jnp.float32, -bound_h, bound_h)
    w_down = jax.random.uniform(kd, (H, I), jnp.float32, -bound_i, bound_i)

    y_ref = lfm2_mlp_reference(x, w_gate, w_up, w_down)

    # f32 path (weights prepared once, as at parameter-load time).
    w_gu, w_dn = prepare_lfm2_mlp_weights(w_gate, w_up, w_down)
    y = lfm2_mlp_prepped(x, w_gu, w_dn)
    y = jax.block_until_ready(y)
    assert y.shape == (B, T, H)
    assert jnp.allclose(y, y_ref, atol=2e-4, rtol=2e-4), "f32 mismatch vs reference"

    # bf16 production path (weights cast once; x cast in-kernel; f32 accumulation).
    y_bf16 = lfm2_mlp_pallas(x, w_gate, w_up, w_down, weight_dtype=jnp.bfloat16)
    y_bf16 = jax.block_until_ready(y_bf16)
    assert y_bf16.shape == (B, T, H)
    assert jnp.allclose(y_bf16, y_ref, atol=3e-2, rtol=3e-2), "bf16 mismatch vs reference"

    print("KERNEL_OK")
</pallas_src>

<mosaic_0001>
module attributes {stable_mosaic.version = 11 : i64} {
  func.func @_mlp_kernel_resident(%arg0: i32, %arg1: i32, %arg2: memref<16x256xf32, #tpu.memory_space<vmem>>, %arg3: memref<2x256x512xf32, #tpu.memory_space<vmem>>, %arg4: memref<512x256xf32, #tpu.memory_space<vmem>>, %arg5: memref<16x256xf32, #tpu.memory_space<vmem>>) attributes {dimension_semantics = [#tpu.dimension_semantics<parallel>, #tpu.dimension_semantics<arbitrary>], iteration_bounds = array<i64: 2, 1>, scalar_prefetch = 0 : i64, scratch_operands = 0 : i64, tpu.core_type = #tpu.core_type<tc>, window_params = [{transform_indices = @transform_0, window_bounds = array<i64: 16, 256>}, {transform_indices = @transform_1, window_bounds = array<i64: 2, 256, 512>}, {transform_indices = @transform_2, window_bounds = array<i64: 512, 256>}, {transform_indices = @transform_3, window_bounds = array<i64: 16, 256>}]} {
    %c0 = arith.constant 0 : index
    %c0_0 = arith.constant 0 : index
    %0 = vector.load %arg2[%c0, %c0_0] : memref<16x256xf32, #tpu.memory_space<vmem>>, vector<16x256xf32>
    %c0_1 = arith.constant 0 : index
    %c0_2 = arith.constant 0 : index
    %c0_3 = arith.constant 0 : index
    %1 = vector.load %arg3[%c0_1, %c0_2, %c0_3] : memref<2x256x512xf32, #tpu.memory_space<vmem>>, vector<1x256x512xf32>
    %2 = vector.shape_cast %1 : vector<1x256x512xf32> to vector<256x512xf32>
    %cst = arith.constant dense<0.000000e+00> : vector<16x512xf32>
    %3 = tpu.matmul %0, %2, %cst {dimension_numbers = #tpu.dot_dimension_numbers<[1], [0], [0], [1], [0, 0, 1, 1], [], []>} : vector<16x256xf32>, vector<256x512xf32>, vector<16x512xf32> -> vector<16x512xf32>
    %c1 = arith.constant 1 : index
    %c0_4 = arith.constant 0 : index
    %c0_5 = arith.constant 0 : index
    %4 = vector.load %arg3[%c1, %c0_4, %c0_5] : memref<2x256x512xf32, #tpu.memory_space<vmem>>, vector<1x256x512xf32>
    %5 = vector.shape_cast %4 : vector<1x256x512xf32> to vector<256x512xf32>
    %cst_6 = arith.constant dense<0.000000e+00> : vector<16x512xf32>
    %6 = tpu.matmul %0, %5, %cst_6 {dimension_numbers = #tpu.dot_dimension_numbers<[1], [0], [0], [1], [0, 0, 1, 1], [], []>} : vector<16x256xf32>, vector<256x512xf32>, vector<16x512xf32> -> vector<16x512xf32>
    %7 = arith.negf %3 : vector<16x512xf32>
    %8 = math.exp %7 : vector<16x512xf32>
    %cst_7 = arith.constant 1.000000e+00 : f32
    %9 = vector.broadcast %cst_7 : f32 to vector<16x512xf32>
    %10 = arith.addf %9, %8 : vector<16x512xf32>
    %11 = arith.divf %9, %10 : vector<16x512xf32>
    %12 = arith.mulf %3, %11 : vector<16x512xf32>
    %13 = arith.mulf %12, %6 : vector<16x512xf32>
    %c0_8 = arith.constant 0 : index
    %c0_9 = arith.constant 0 : index
    %14 = vector.load %arg4[%c0_8, %c0_9] : memref<512x256xf32, #tpu.memory_space<vmem>>, vector<512x256xf32>
    %cst_10 = arith.constant dense<0.000000e+00> : vector<16x256xf32>
    %15 = tpu.matmul %13, %14, %cst_10 {dimension_numbers = #tpu.dot_dimension_numbers<[1], [0], [0], [1], [0, 0, 1, 1], [], []>} : vector<16x512xf32>, vector<512x256xf32>, vector<16x256xf32> -> vector<16x256xf32>
    %c0_11 = arith.constant 0 : index
    %c0_12 = arith.constant 0 : index
    %16 = vector.load %arg5[%c0_11, %c0_12] : memref<16x256xf32, #tpu.memory_space<vmem>>, vector<16x256xf32>
    tpu.vector_store %arg5[%c0_11, %c0_12], %15 {strides = array<i32>} : memref<16x256xf32, #tpu.memory_space<vmem>>, vector<16x256xf32>,
    return
  }
  func.func @transform_0(%arg0: i32, %arg1: i32) -> (i32, i32) {
    %c0_i32 = arith.constant 0 : i32
    %c0_i32_0 = arith.constant 0 : i32
    return %arg0, %c0_i32 : i32, i32
  }
  func.func @transform_1(%arg0: i32, %arg1: i32) -> (i32, i32, i32) {
    %c0_i32 = arith.constant 0 : i32
    %c0_i32_0 = arith.constant 0 : i32
    %c0_i32_1 = arith.constant 0 : i32
    return %c0_i32, %c0_i32_0, %arg1 : i32, i32, i32
  }
  func.func @transform_2(%arg0: i32, %arg1: i32) -> (i32, i32) {
    %c0_i32 = arith.constant 0 : i32
    %c0_i32_0 = arith.constant 0 : i32
    return %arg1, %c0_i32 : i32, i32
  }
  func.func @transform_3(%arg0: i32, %arg1: i32) -> (i32, i32) {
    %c0_i32 = arith.constant 0 : i32
    %c0_i32_0 = arith.constant 0 : i32
    return %arg0, %c0_i32 : i32, i32
  }
}

</mosaic_0001>

<bundles_post_ra>
// kernel: tpu_custom_call.1
= control target key start
LH: loop header
LB: loop body
LE: loop exit
PB: predicated region body
PF: predicated region fallthrough
CT: control target
= control target key end

     0   :  { %8 = vsyncpa [#allocation3], 0  ;;  %s2347_s0 = inlined_call_operand.hbm [shape: f32[32,256], index: 0, kind: input, shape index: {}]   ;;  %s2348_s1 = inlined_call_operand.hbm [shape: f32[2,256,512], index: 1, kind: input, shape index: {}]   ;;  %s2349_s2 = inlined_call_operand.hbm [shape: f32[512,256], index: 2, kind: input, shape index: {}]   ;;  %s2350_s3 = inlined_call_operand.hbm [shape: f32[32,256], index: 3, kind: output, shape index: {}]  }
   0x1   :  { %10 = vsyncpa [#allocation3 + $0x1], 0 }
   0x2   :  { %11 = vsyncpa [#allocation6], 0 }
   0x3   :  { %12 = vsyncpa [#allocation4], 0 }
   0x4   :  { %14 = vsyncpa [#allocation4 + $0x1], 0  ;;  %s2036_s12 = smov 0   ;;  %s2038_s13 = smov 0  }
   0x5   :  { %s2040_s14 = smov 0   ;;  %s2042_s15 = smov 0  }
   0x6   :  { %s2044_s16 = smov 0   ;;  %s2046_s17 = smov 0  }
   0x7 LB: > { %s1290_s18 = sadd.s32 4294967295, %s2004_s17   ;;  %s1291_s19 = sadd.s32 4294967294, %s2004_s17   ;;  %s2004_s17 = sphi %s2046_s17, %s20_s17   ;;  %s2000_s16 = sphi %s2044_s16, %s2372_s16   ;;  %s1996_s15 = sphi %s2042_s15, %s2371_s15   ;;  %s1992_s14 = sphi %s2040_s14, %s2370_s14   ;;  %s1988_s13 = sphi %s2038_s13, %s2369_s13   ;;  %s1984_s12 = sphi %s2036_s12, %s2368_s12  }
   0x8   : > { %p52_p0 = scmp.ne.s32.totalorder %s1988_s13, %s1984_s12  ;;  %p2070_p1 = scmp.eq.s32.totalorder %s1290_s18, 0 }
   0x9   : > { %p2074_p2 = scmp.eq.s32.totalorder %s1290_s18, 1  ;;  %p134_p3 = scmp.eq.s32.totalorder %s1291_s19, 1 }
   0xa   : > { %s2355_s20 = scalar_select %p2070_p1, 1, 0 }
   0xb   : > { %p2080_p4 = por %p2070_p1, %p52_p0  ;;  %p1292_p5 = scmp.ge.s32.totalorder %s2004_s17, 1 }
   0xc   : > { %p2085_p6 = por %p134_p3, %p52_p0  ;;  %p141_p7 = scmp.lt.s32.totalorder %s2004_s17, 3 }
   0xd   : > { %s2357_s22 = scalar_select %p2080_p4, 1, 0 }
   0xe   : > { %s2358_s23 = scalar_select %p2085_p6, 1, 0 }
   0xf   : > { %p2090_p8 = pnand %p1292_p5, %p141_p7  ;;  %s2006_s25 = smov [#allocation5]  }
  0x10   : > { %s156_s26 = sshll.u32 %s2006_s25, 4  ;;  %s2007_s28 = smov [#allocation7]   ;;  %s2094_s26 = int_to_ptr.vmem [resolvable:$true] %s156_s26 }
  0x11   : > { %p1723_p9 = pneg %p2090_p8  ;;  %s173_s29 = sshll.u32 %s2007_s28, 4  ;;  %s2105_s29 = int_to_ptr.vmem [resolvable:$true] %s173_s29 }
  0x12   : > { %s1832_s5 = scalar_lea.hbm %s2348_s1, 32768 }
  0x13   : > { %p2101_p11 = pnand %p1723_p9, %p2070_p1  ;;  %p1833_p12 = scmp.ne.s32.totalorder %s2348_s1, %s1832_s5 }
  0x14   : > { %p1839_p5 = scmp.lt.u32.totalorder %s1832_s5, %s2348_s1 }
  0x15   : > { %p1834_p13 = pneg %p2101_p11 }
  0x17   : > { %p1835_p0 = pnand %p1834_p13, %p1833_p12 }
  0x19   : > { %p1836_p3 = pneg %p1835_p0 }
  0x1b   : > { %p1841_p7 = pnand %p1839_p5, %p1836_p3 }
  0x1d   : > { %1844 = shalt.err (!%p1841_p7)
}
  0x1e   : > { %s1845_s10 = scalar_lea.vmem %s2094_s26, 32768  ;;  %p1853_p1 = scmp.lt.s32.totalorder %s2094_s26, %s2094_s26 }
  0x1f   : > { %p1846_p9 = scmp.ne.s32.totalorder %s2094_s26, %s1845_s10  ;;  %p1854_p12 = scmp.lt.s32.totalorder %s1845_s10, %s1845_s10 }
  0x21   : > { %p1848_p10 = pnand %p1846_p9, %p1834_p13  ;;  %p1855_p0 = por %p1854_p12, %p1853_p1 }
  0x23   : > { %p1849_p6 = pneg %p1848_p10 }
  0x25   : > { %p1856_p4 = pnand %p1855_p0, %p1849_p6 }
  0x27   : > { %1859 = shalt.err (!%p1856_p4)
}
  0x28   : > { %s2008_s11 = smov 512   ;;  %s2009_s18 = smov 32  }
  0x29   : > { %1726 = dma.hbm_to_vmem [thread:$0]  (!%p2101_p11), %s2348_s1, 32768, %s2094_s26, [#allocation6], %s2008_s11, %s2008_s11, %s2009_s18  }
  0x2a   : > { %s1860_s4 = scalar_lea.hbm %s2349_s2, 16384 }
  0x2b   : > { %p1861_p1 = scmp.ne.s32.totalorder %s2349_s2, %s1860_s4  ;;  %p1867_p10 = scmp.lt.u32.totalorder %s1860_s4, %s2349_s2 }
  0x2d   : > { %p1863_p4 = pnand %p1861_p1, %p1834_p13 }
  0x2f   : > { %p1864_p6 = pneg %p1863_p4 }
  0x31   : > { %p1869_p3 = pnand %p1867_p10, %p1864_p6 }
  0x33   : > { %1872 = shalt.err (!%p1869_p3)
}
  0x34   : > { %s1873_s26 = scalar_lea.vmem %s2105_s29, 16384  ;;  %p1881_p12 = scmp.lt.s32.totalorder %s2105_s29, %s2105_s29 }
  0x35   : > { %p1874_p5 = scmp.ne.s32.totalorder %s2105_s29, %s1873_s26  ;;  %p1882_p0 = scmp.lt.s32.totalorder %s1873_s26, %s1873_s26 }
  0x37   : > { %p1876_p7 = pnand %p1874_p5, %p1834_p13  ;;  %p1883_p1 = por %p1882_p0, %p1881_p12 }
  0x39   : > { %p1877_p9 = pneg %p1876_p7 }
  0x3b   : > { %p1884_p4 = pnand %p1883_p1, %p1877_p9 }
  0x3d   : > { %1887 = shalt.err (!%p1884_p4)
}
  0x3e   : > { %s2010_s9 = smov 256   ;;  %s2011_s10 = smov 16  }
  0x3f   : > { %1729 = dma.hbm_to_vmem [thread:$0]  (!%p2101_p11), %s2349_s2, 16384, %s2105_s29, [#allocation6], %s2010_s9, %s2010_s9, %s2011_s10  }
  0x40   : > { %s32_s19 = sadd.s32 1, %s2000_s16  ;;  %s39_s25 = sadd.s32 1, %s1992_s14 }
  0x41   : > { %p34_p13 = scmp.ge.s32.totalorder %s32_s19, 2  ;;  %p46_p6 = scmp.ne.s32.totalorder %s1992_s14, %s1988_s13 }
  0x42   : > { %p47_p10 = scmp.eq.s32.totalorder %s2004_s17, 0  ;;  %p1740_p3 = scmp.lt.s32.totalorder %s2004_s17, 2 }
  0x43   : > { %s2374_s19 = smov (%p34_p13, %s32_s19), 0  ;;  %p2172_p7 = por %p2074_p2, %p46_p6 }
  0x44   : > { %p48_p5 = por %p47_p10, %p46_p6  ;;  %s36_s28 = ssub.s32 %s2000_s16, %s2374_s19 }
  0x45   : > { %s2361_s27 = scalar_select %p2172_p7, 1, 0 }
  0x46   : > { %s187_s30 = sand.u32 1, %s1992_s14   ;;  %p37_p9 = scmp.eq.s32.totalorder %s36_s28, 0 }
  0x47   : > { %s1296_s29 = sshll.u32 %s187_s30, 5  ;;  %s1320_s4 = sshll.u32 %s2000_s16, 9 }
  0x48   : > { %s2181_s5 = scalar_select %p37_p9, %s1992_s14, %s39_s25  }
  0x49   : > { %s2186_s8 = scalar_lea.hbm %s2347_s0, %s1320_s4  ;;  %s191_s21 = scalar_lea.vmem [#allocation2], %s1296_s29 }
  0x4a   : > { %s199_s26 = sshll.u32 %s191_s21, 4  ;;  %p2190_p2 = pnand %p1740_p3, %p48_p5  ;;  %s2194_s26 = int_to_ptr.vmem [resolvable:$true] %s199_s26 }
  0x4b   : > { %s2196_s18 = scalar_lea.sflag [#allocation3], %s187_s30  ;;  %s1888_s25 = scalar_lea.hbm %s2186_s8, 512 }
  0x4c   : > { %p1889_p11 = scmp.ne.s32.totalorder %s2186_s8, %s1888_s25  ;;  %p1890_p12 = pneg %p2190_p2 }
  0x4d   : > { %s1893_s4 = scalar_lea.hbm %s2347_s0, 1024  ;;  %p1894_p4 = scmp.lt.u32.totalorder %s2186_s8, %s2347_s0 }
  0x4e   : > { %p1891_p0 = pnand %p1890_p12, %p1889_p11  ;;  %p1895_p13 = scmp.lt.u32.totalorder %s1893_s4, %s1888_s25 }
  0x4f   : > { %p1897_p10 = scmp.lt.u32.totalorder %s1888_s25, %s2186_s8 }
  0x50   : > { %p1892_p1 = pneg %p1891_p0  ;;  %p1896_p6 = por %p1895_p13, %p1894_p4 }
  0x52   : > { %p1898_p3 = por %p1897_p10, %p1896_p6 }
  0x54   : > { %p1899_p5 = pnand %p1898_p3, %p1892_p1 }
  0x56   : > { %1902 = shalt.err (!%p1899_p5)
}
  0x57   : > { %s1903_s30 = scalar_lea.vmem %s2194_s26, 512  ;;  %s2012_s21 = smov [#allocation2]  }
  0x58   : > { %p1904_p9 = scmp.ne.s32.totalorder %s2194_s26, %s1903_s30  ;;  %s1908_s28 = sshll.u32 %s2012_s21, 4  ;;  %s1909_s28 = int_to_ptr.vmem [resolvable:$false] %s1908_s28 }
  0x59   : > { %s1910_s29 = scalar_lea.vmem %s1909_s28, 1024  ;;  %p1911_p7 = scmp.lt.s32.totalorder %s2194_s26, %s1909_s28 }
  0x5a   : > { %p1906_p11 = pnand %p1904_p9, %p1890_p12  ;;  %p1912_p4 = scmp.lt.s32.totalorder %s1910_s29, %s1903_s30 }
  0x5c   : > { %p1907_p0 = pneg %p1906_p11  ;;  %p1913_p13 = por %p1912_p4, %p1911_p7 }
  0x5e   : > { %p1914_p6 = pnand %p1913_p13, %p1907_p0 }
  0x60   : > { %1917 = shalt.err (!%p1914_p6)
}
  0x61   : > { %1733 = dma.hbm_to_vmem [thread:$0]  (!%p2190_p2), %s2186_s8, 512, %s2194_s26, %s2196_s18, %s2010_s9, %s2010_s9, %s2011_s10  }
  0x62   : > { %211 = sbr.rel (%p2090_p8) target bundleno = 754 (0x2f2), region = 32  ;;  %s2230_s25 = sand.u32 (!%p2090_p8), 1, %s1988_s13  }
  0x63   : > { %s1301_s4 = sshll.u32 (!%p2090_p8), %s2230_s25, 5  ;;  %s214_s6 = scalar_lea.sflag (!%p2090_p8), [#allocation3], %s2230_s25 }
  0x64   : > { %s2236_s11 = scalar_lea.vmem (!%p2090_p8), [#allocation2], %s1301_s4  ;;  %p2363_p7 = scmp.ne.s32.totalorder (!%p2090_p8), %s2357_s22, 0 }
  0x69   : > { %1971 = dma.done.wait (%p2363_p7), %s214_s6, 512  }
  0x6a   : > { %1973 = vsyncadd (%p2363_p7), %s214_s6, 4294966784  ;;  %p2364_p2 = scmp.ne.s32.totalorder %s2355_s20, 0 }
  0x6c   : > { %1975 = dma.done.wait (%p2364_p2), [#allocation6], 49152  }
  0x6d   : > { %1977 = vsyncadd (%p2364_p2), [#allocation6], 4294918144  ;;  %v257_v0 = vld [vmem:[#allocation5 + $0x8] sm:$0xff]  ;;  %v256_v2 = vld [vmem:[#allocation5] sm:$0xff]  ;;  %s247_s20 = scalar_lea.vmem [#allocation8], %s1301_s4  ;;  %s1322_s24 = sshll.u32 %s1996_s15, 9 }
  0x6e   : > { %v261_v1 = vld [vmem:[#allocation5 + $0x28] sm:$0xff]  ;;  %v260_v4 = vld [vmem:[#allocation5 + $0x20] sm:$0xff]  ;;  %s1186_s22 = sshll.u32 %s247_s20, 4  ;;  %s2298_s8 = scalar_lea.hbm %s2350_s3, %s1322_s24  ;;  %s2293_s22 = int_to_ptr.vmem [resolvable:$true] %s1186_s22 }
  0x6f   : > { %v1323_v3 = vpack.c.bf16 %v261_v1, %v257_v0  ;;  %v265_v5 = vld [vmem:[#allocation5 + $0x48] sm:$0xff]  ;;  %v1325_v7 = vpack.c.bf16 %v260_v4, %v256_v2  ;;  %v264_v9 = vld [vmem:[#allocation5 + $0x40] sm:$0xff]  ;;  %s1172_s26 = scalar_lea.sflag [#allocation4], %s2230_s25  ;;  %s1918_s18 = scalar_lea.vmem %s2293_s22, 512 }
  0x70   : > { %v269_v6 = vld [vmem:[#allocation5 + $0x68] sm:$0xff]  ;;  %v268_v10 = vld [vmem:[#allocation5 + $0x60] sm:$0xff]  ;;  %p1919_p8 = scmp.ne.s32.totalorder %s2293_s22, %s1918_s18  ;;  %p2365_p12 = scmp.ne.s32.totalorder %s2361_s27, 0 }
  0x71   : > { %v1327_v8 = vpack.c.bf16 %v269_v6, %v265_v5  ;;  %v273_v11 = vld [vmem:[#allocation5 + $0x88] sm:$0xff]  ;;  %1324 = vmatprep.subr.bf16.mxu1 %v1323_v3  ;;  %v1329_v13 = vpack.c.bf16 %v268_v10, %v264_v9  ;;  %v272_v15 = vld [vmem:[#allocation5 + $0x80] sm:$0xff]  ;;  %s2013_s15 = smov [#allocation8]  }
  0x72   : > { %v277_v12 = vld [vmem:[#allocation5 + $0xa8] sm:$0xff]  ;;  %1326 = vmatpush1.bf16.msra.mxu1 %v1325_v7  ;;  %v276_v16 = vld [vmem:[#allocation5 + $0xa0] sm:$0xff]  ;;  %p1920_p1 = pnand %p1919_p8, %p2365_p12  ;;  %s1922_s7 = sshll.u32 %s2013_s15, 4  ;;  %s1923_s7 = int_to_ptr.vmem [resolvable:$false] %s1922_s7 }
  0x73   : > { %1328 = vmatprep.subr.bf16.mxu1 %v1327_v8  ;;  %v1331_v14 = vpack.c.bf16 %v277_v12, %v273_v11  ;;  %v281_v17 = vld [vmem:[#allocation5 + $0xc8] sm:$0xff]  ;;  %v1333_v19 = vpack.c.bf16 %v276_v16, %v272_v15  ;;  %v280_v21 = vld [vmem:[#allocation5 + $0xc0] sm:$0xff]  ;;  %s1924_s30 = scalar_lea.vmem %s1923_s7, 1024  ;;  %p1925_p3 = scmp.lt.s32.totalorder %s2293_s22, %s1923_s7 }
  0x74   : > { %v285_v18 = vld [vmem:[#allocation5 + $0xe8] sm:$0xff]  ;;  %v284_v22 = vld [vmem:[#allocation5 + $0xe0] sm:$0xff]  ;;  %p1921_p10 = pneg %p1920_p1  ;;  %p1926_p5 = scmp.lt.s32.totalorder %s1924_s30, %s1918_s18 }
  0x75   : > { %v1335_v20 = vpack.c.bf16 %v285_v18, %v281_v17  ;;  %v289_v23 = vld [vmem:[#allocation5 + $0x108] sm:$0xff]  ;;  %v539_v28 = vld [vmem:[#allocation5 + $0x400] sm:$0xff]  ;;  %v1337_v30 = vpack.c.bf16 %v284_v22, %v280_v21 }
  0x76   : > { %1330 = vmatpush1.bf16.msra.mxu1 %v1329_v13  ;;  %v293_v24 = vld [vmem:[#allocation5 + $0x128] sm:$0xff]  ;;  %v543_v29 = vld [vmem:[#allocation5 + $0x420] sm:$0xff]  ;;  %p1927_p9 = por %p1926_p5, %p1925_p3 }
  0x77   : > { %1332 = vmatprep.subr.bf16.mxu1 %v1331_v14  ;;  %v540_v25 = vld [vmem:[#allocation5 + $0x408] sm:$0xff]  ;;  %v288_v31 = vld [vmem:[#allocation5 + $0x100] sm:$0xff]  ;;  %v1453_v32 = vpack.c.bf16 %v543_v29, %v539_v28  ;;  %v1339_v34 = vpack.c.bf16 %v293_v24, %v289_v23 }
  0x78   : > { %v544_v26 = vld [vmem:[#allocation5 + $0x428] sm:$0xff]  ;;  %v292_v35 = vld [vmem:[#allocation5 + $0x120] sm:$0xff]  ;;  %p1928_p11 = pnand %p1927_p9, %p1921_p10 }
  0x79   : > { %v1451_v27 = vpack.c.bf16 %v544_v26, %v540_v25  ;;  %v548_v33 = vld [vmem:[#allocation5 + $0x448] sm:$0xff]  ;;  %v547_v40 = vld [vmem:[#allocation5 + $0x440] sm:$0xff]  ;;  %v1341_v45 = vpack.c.bf16 %v292_v35, %v288_v31 }
  0x7a   : > { %1334 = vmatpush1.bf16.msra.mxu1 %v1333_v19  ;;  %v297_v36 = vld [vmem:[#allocation5 + $0x148] sm:$0xff]  ;;  %v551_v41 = vld [vmem:[#allocation5 + $0x460] sm:$0xff] }
  0x7b   : > { %1336 = vmatprep.subr.bf16.mxu1 %v1335_v20  ;;  %1452 = vmatprep.subr.bf16.mxu0 %v1451_v27  ;;  %v552_v37 = vld [vmem:[#allocation5 + $0x468] sm:$0xff]  ;;  %v1457_v42 = vpack.c.bf16 %v551_v41, %v547_v40  ;;  %v296_v46 = vld [vmem:[#allocation5 + $0x140] sm:$0xff] }
  0x7c   : > { %v301_v38 = vld [vmem:[#allocation5 + $0x168] sm:$0xff]  ;;  %1454 = vmatpush1.bf16.msra.mxu0 %v1453_v32  ;;  %v1455_v39 = vpack.c.bf16 %v552_v37, %v548_v33  ;;  %v555_v48 = vld [vmem:[#allocation5 + $0x480] sm:$0xff] }
  0x7d   : > { %v556_v43 = vld [vmem:[#allocation5 + $0x488] sm:$0xff]  ;;  %v1343_v49 = vpack.c.bf16 %v301_v38, %v297_v36  ;;  %v300_v50 = vld [vmem:[#allocation5 + $0x160] sm:$0xff] }
  0x7e   : > { %v560_v44 = vld [vmem:[#allocation5 + $0x4a8] sm:$0xff]  ;;  %1338 = vmatpush1.bf16.msra.mxu1 %v1337_v30  ;;  %1456 = vmatprep.subr.bf16.mxu0 %v1455_v39  ;;  %v559_v52 = vld [vmem:[#allocation5 + $0x4a0] sm:$0xff]  ;;  %v1345_v60 = vpack.c.bf16 %v300_v50, %v296_v46 }
  0x7f   : > { %v1459_v47 = vpack.c.bf16 %v560_v44, %v556_v43  ;;  %1340 = vmatprep.subr.bf16.mxu1 %v1339_v34  ;;  %v305_v51 = vld [vmem:[#allocation5 + $0x188] sm:$0xff]  ;;  %v1461_v54 = vpack.c.bf16 %v559_v52, %v555_v48  ;;  %v563_v58 = vld [vmem:[#allocation5 + $0x4c0] sm:$0xff] }
  0x80   : > { %v309_v53 = vld [vmem:[#allocation5 + $0x1a8] sm:$0xff]  ;;  %1458 = vmatpush1.bf16.msra.mxu0 %v1457_v42  ;;  %v567_v59 = vld [vmem:[#allocation5 + $0x4e0] sm:$0xff] }
  0x81   : > { %v564_v55 = vld [vmem:[#allocation5 + $0x4c8] sm:$0xff]  ;;  %1460 = vmatprep.subr.bf16.mxu0 %v1459_v47  ;;  %v1347_v62 = vpack.c.bf16 %v309_v53, %v305_v51  ;;  %v304_v63 = vld [vmem:[#allocation5 + $0x180] sm:$0xff]  ;;  %v1465_v4 = vpack.c.bf16 %v567_v59, %v563_v58 }
  0x82   : > { %v568_v56 = vld [vmem:[#allocation5 + $0x4e8] sm:$0xff]  ;;  %1342 = vmatpush1.bf16.msra.mxu1 %v1341_v45  ;;  %v308_v0 = vld [vmem:[#allocation5 + $0x1a0] sm:$0xff] }
  0x83   : > { %v1463_v57 = vpack.c.bf16 %v568_v56, %v564_v55  ;;  %v572_v61 = vld [vmem:[#allocation5 + $0x508] sm:$0xff]  ;;  %1344 = vmatprep.subr.bf16.mxu1 %v1343_v49  ;;  %v571_v6 = vld [vmem:[#allocation5 + $0x500] sm:$0xff]  ;;  %v1349_v8 = vpack.c.bf16 %v308_v0, %v304_v63 }
  0x84   : > { %v576_v1 = vld [vmem:[#allocation5 + $0x528] sm:$0xff]  ;;  %1462 = vmatpush1.bf16.msra.mxu0 %v1461_v54  ;;  %v575_v7 = vld [vmem:[#allocation5 + $0x520] sm:$0xff] }
  0x85   : > { %v313_v2 = vld [vmem:[#allocation5 + $0x1c8] sm:$0xff]  ;;  %1464 = vmatprep.subr.bf16.mxu0 %v1463_v57  ;;  %v1467_v5 = vpack.c.bf16 %v576_v1, %v572_v61  ;;  %v312_v12 = vld [vmem:[#allocation5 + $0x1c0] sm:$0xff]  ;;  %v1469_v16 = vpack.c.bf16 %v575_v7, %v571_v6 }
  0x86   : > { %v317_v3 = vld [vmem:[#allocation5 + $0x1e8] sm:$0xff]  ;;  %1346 = vmatpush1.bf16.msra.mxu1 %v1345_v60  ;;  %v316_v13 = vld [vmem:[#allocation5 + $0x1e0] sm:$0xff] }
  0x87   : > { %v580_v9 = vld [vmem:[#allocation5 + $0x548] sm:$0xff]  ;;  %1348 = vmatprep.subr.bf16.mxu1 %v1347_v62  ;;  %v1351_v11 = vpack.c.bf16 %v317_v3, %v313_v2  ;;  %v579_v18 = vld [vmem:[#allocation5 + $0x540] sm:$0xff]  ;;  %v1353_v20 = vpack.c.bf16 %v316_v13, %v312_v12 }
  0x88   : > { %v584_v10 = vld [vmem:[#allocation5 + $0x568] sm:$0xff]  ;;  %1466 = vmatpush1.bf16.msra.mxu0 %v1465_v4  ;;  %v583_v19 = vld [vmem:[#allocation5 + $0x560] sm:$0xff] }
  0x89   : > { %v321_v14 = vld [vmem:[#allocation5 + $0x208] sm:$0xff]  ;;  %1468 = vmatprep.subr.bf16.mxu0 %v1467_v5  ;;  %v1471_v17 = vpack.c.bf16 %v584_v10, %v580_v9  ;;  %v320_v24 = vld [vmem:[#allocation5 + $0x200] sm:$0xff]  ;;  %v1473_v28 = vpack.c.bf16 %v583_v19, %v579_v18 }
  0x8a   : > { %v325_v15 = vld [vmem:[#allocation5 + $0x228] sm:$0xff]  ;;  %1350 = vmatpush1.bf16.msra.mxu1 %v1349_v8  ;;  %v324_v25 = vld [vmem:[#allocation5 + $0x220] sm:$0xff] }
  0x8b   : > { %v588_v21 = vld [vmem:[#allocation5 + $0x588] sm:$0xff]  ;;  %1352 = vmatprep.subr.bf16.mxu1 %v1351_v11  ;;  %v1355_v23 = vpack.c.bf16 %v325_v15, %v321_v14  ;;  %v587_v30 = vld [vmem:[#allocation5 + $0x580] sm:$0xff]  ;;  %v1357_v32 = vpack.c.bf16 %v324_v25, %v320_v24 }
  0x8c   : > { %v592_v22 = vld [vmem:[#allocation5 + $0x5a8] sm:$0xff]  ;;  %1470 = vmatpush1.bf16.msra.mxu0 %v1469_v16  ;;  %v591_v31 = vld [vmem:[#allocation5 + $0x5a0] sm:$0xff] }
  0x8d   : > { %v329_v26 = vld [vmem:[#allocation5 + $0x248] sm:$0xff]  ;;  %1472 = vmatprep.subr.bf16.mxu0 %v1471_v17  ;;  %v1475_v29 = vpack.c.bf16 %v592_v22, %v588_v21  ;;  %v328_v36 = vld [vmem:[#allocation5 + $0x240] sm:$0xff]  ;;  %v1477_v41 = vpack.c.bf16 %v591_v31, %v587_v30 }
  0x8e   : > { %v333_v27 = vld [vmem:[#allocation5 + $0x268] sm:$0xff]  ;;  %1354 = vmatpush1.bf16.msra.mxu1 %v1353_v20  ;;  %v332_v37 = vld [vmem:[#allocation5 + $0x260] sm:$0xff] }
  0x8f   : > { %v596_v33 = vld [vmem:[#allocation5 + $0x5c8] sm:$0xff]  ;;  %1356 = vmatprep.subr.bf16.mxu1 %v1355_v23  ;;  %v1359_v35 = vpack.c.bf16 %v333_v27, %v329_v26  ;;  %v595_v43 = vld [vmem:[#allocation5 + $0x5c0] sm:$0xff]  ;;  %v1361_v45 = vpack.c.bf16 %v332_v37, %v328_v36 }
  0x90   : > { %v600_v34 = vld [vmem:[#allocation5 + $0x5e8] sm:$0xff]  ;;  %1474 = vmatpush1.bf16.msra.mxu0 %v1473_v28  ;;  %v599_v44 = vld [vmem:[#allocation5 + $0x5e0] sm:$0xff] }
  0x91   : > { %v2247_v38 = vld [vmem:[%s2236_s11 + $0x8] sm:$0xff]  ;;  %1476 = vmatprep.subr.bf16.mxu0 %v1475_v29  ;;  %v1479_v42 = vpack.c.bf16 %v600_v34, %v596_v33  ;;  %v336_v49 = vld [vmem:[#allocation5 + $0x280] sm:$0xff]  ;;  %v1481_v53 = vpack.c.bf16 %v599_v44, %v595_v43 }
  0x92   : > { %v337_v39 = vld [vmem:[#allocation5 + $0x288] sm:$0xff]  ;;  %448 = vmatprep.mubr.f32.mxu1 %v2247_v38  ;;  %731 = vmatprep.mubr.f32.mxu0 %v2247_v38  ;;  %v340_v50 = vld [vmem:[#allocation5 + $0x2a0] sm:$0xff] }
  0x93   : > { %v341_v40 = vld [vmem:[#allocation5 + $0x2a8] sm:$0xff]  ;;  %1358 = vmatpush1.bf16.msra.mxu1 %v1357_v32  ;;  %v603_v55 = vld [vmem:[#allocation5 + $0x600] sm:$0xff]  ;;  %v1365_v57 = vpack.c.bf16 %v340_v50, %v336_v49  ;;  %v263_v49 = vld [vmem:[#allocation5 + $0x38] sm:$0xff] }
  0x94   : > { %v604_v46 = vld [vmem:[#allocation5 + $0x608] sm:$0xff]  ;;  %1360 = vmatprep.subr.bf16.mxu1 %v1359_v35  ;;  %v1363_v48 = vpack.c.bf16 %v341_v40, %v337_v39  ;;  %1478 = vmatpush1.bf16.msra.mxu0 %v1477_v41  ;;  %v607_v56 = vld [vmem:[#allocation5 + $0x620] sm:$0xff] }
  0x95   : > { %v608_v47 = vld [vmem:[#allocation5 + $0x628] sm:$0xff]  ;;  %1480 = vmatprep.subr.bf16.mxu0 %v1479_v42  ;;  %v344_v61 = vld [vmem:[#allocation5 + $0x2c0] sm:$0xff]  ;;  %v1485_v1 = vpack.c.bf16 %v607_v56, %v603_v55 }
  0x96   : > { %v345_v51 = vld [vmem:[#allocation5 + $0x2c8] sm:$0xff]  ;;  %v1483_v54 = vpack.c.bf16 %v608_v47, %v604_v46  ;;  %v348_v62 = vld [vmem:[#allocation5 + $0x2e0] sm:$0xff] }
  0x97   : > { %v349_v52 = vld [vmem:[#allocation5 + $0x2e8] sm:$0xff]  ;;  %1362 = vmatpush1.bf16.msra.mxu1 %v1361_v45  ;;  %v611_v3 = vld [vmem:[#allocation5 + $0x640] sm:$0xff]  ;;  %v1369_v5 = vpack.c.bf16 %v348_v62, %v344_v61  ;;  %v271_v61 = vld [vmem:[#allocation5 + $0x78] sm:$0xff] }
  0x98   : > { %v612_v58 = vld [vmem:[#allocation5 + $0x648] sm:$0xff]  ;;  %1364 = vmatprep.subr.bf16.mxu1 %v1363_v48  ;;  %v1367_v60 = vpack.c.bf16 %v349_v52, %v345_v51  ;;  %1482 = vmatpush1.bf16.msra.mxu0 %v1481_v53  ;;  %v615_v4 = vld [vmem:[#allocation5 + $0x660] sm:$0xff]  ;;  %v259_v48 = vld [vmem:[#allocation5 + $0x18] sm:$0xff] }
  0x99   : > { %v616_v59 = vld [vmem:[#allocation5 + $0x668] sm:$0xff]  ;;  %1484 = vmatprep.subr.bf16.mxu0 %v1483_v54  ;;  %v352_v9 = vld [vmem:[#allocation5 + $0x300] sm:$0xff]  ;;  %v1489_v13 = vpack.c.bf16 %v615_v4, %v611_v3 }
  0x9a   : > { %v353_v63 = vld [vmem:[#allocation5 + $0x308] sm:$0xff]  ;;  %v1487_v2 = vpack.c.bf16 %v616_v59, %v612_v58  ;;  %v356_v10 = vld [vmem:[#allocation5 + $0x320] sm:$0xff]  ;;  %v258_v58 = vld [vmem:[#allocation5 + $0x10] sm:$0xff] }
  0x9b   : > { %v357_v0 = vld [vmem:[#allocation5 + $0x328] sm:$0xff]  ;;  %1366 = vmatpush1.bf16.msra.mxu1 %v1365_v57  ;;  %v619_v15 = vld [vmem:[#allocation5 + $0x680] sm:$0xff]  ;;  %v1373_v17 = vpack.c.bf16 %v356_v10, %v352_v9  ;;  %v1387_v57 = vpack.c.bf16 %v263_v49, %v259_v48  ;;  %v262_v59 = vld [vmem:[#allocation5 + $0x30] sm:$0xff] }
  0x9c   : > { %v620_v6 = vld [vmem:[#allocation5 + $0x688] sm:$0xff]  ;;  %1368 = vmatprep.subr.bf16.mxu1 %v1367_v60  ;;  %v1371_v8 = vpack.c.bf16 %v357_v0, %v353_v63  ;;  %1486 = vmatpush1.bf16.msra.mxu0 %v1485_v1  ;;  %v623_v16 = vld [vmem:[#allocation5 + $0x6a0] sm:$0xff]  ;;  %v267_v60 = vld [vmem:[#allocation5 + $0x58] sm:$0xff]  ;;  %v1389_v3 = vpack.c.bf16 %v262_v59, %v258_v58 }
  0x9d   : > { %v624_v7 = vld [vmem:[#allocation5 + $0x6a8] sm:$0xff]  ;;  %1488 = vmatprep.subr.bf16.mxu0 %v1487_v2  ;;  %v360_v21 = vld [vmem:[#allocation5 + $0x340] sm:$0xff]  ;;  %v1493_v25 = vpack.c.bf16 %v623_v16, %v619_v15  ;;  %v2255_v9 = vld [vmem:[%s2236_s11 + $0x18] sm:$0xff] }
  0x9e   : > { %v361_v11 = vld [vmem:[#allocation5 + $0x348] sm:$0xff]  ;;  %v1491_v14 = vpack.c.bf16 %v624_v7, %v620_v6  ;;  %v364_v22 = vld [vmem:[#allocation5 + $0x360] sm:$0xff]  ;;  %v1391_v6 = vpack.c.bf16 %v271_v61, %v267_v60  ;;  %v266_v7 = vld [vmem:[#allocation5 + $0x50] sm:$0xff] }
  0x9f   : > { %v365_v12 = vld [vmem:[#allocation5 + $0x368] sm:$0xff]  ;;  %1370 = vmatpush1.bf16.msra.mxu1 %v1369_v5  ;;  %v627_v27 = vld [vmem:[#allocation5 + $0x6c0] sm:$0xff]  ;;  %v1377_v29 = vpack.c.bf16 %v364_v22, %v360_v21  ;;  %v275_v10 = vld [vmem:[#allocation5 + $0x98] sm:$0xff] }
  0xa0   : > { %v628_v18 = vld [vmem:[#allocation5 + $0x6c8] sm:$0xff]  ;;  %1372 = vmatprep.subr.bf16.mxu1 %v1371_v8  ;;  %v1375_v20 = vpack.c.bf16 %v365_v12, %v361_v11  ;;  %1490 = vmatpush1.bf16.msra.mxu0 %v1489_v13  ;;  %v631_v28 = vld [vmem:[#allocation5 + $0x6e0] sm:$0xff]  ;;  %v270_v8 = vld [vmem:[#allocation5 + $0x70] sm:$0xff] }
  0xa1   : > { %v632_v19 = vld [vmem:[#allocation5 + $0x6e8] sm:$0xff]  ;;  %1492 = vmatprep.subr.bf16.mxu0 %v1491_v14  ;;  %v368_v33 = vld [vmem:[#allocation5 + $0x380] sm:$0xff]  ;;  %v1497_v37 = vpack.c.bf16 %v631_v28, %v627_v27  ;;  %v279_v11 = vld [vmem:[#allocation5 + $0xb8] sm:$0xff]  ;;  %v1393_v16 = vpack.c.bf16 %v270_v8, %v266_v7 }
  0xa2   : > { %v369_v23 = vld [vmem:[#allocation5 + $0x388] sm:$0xff]  ;;  %v1495_v26 = vpack.c.bf16 %v632_v19, %v628_v18  ;;  %v372_v34 = vld [vmem:[#allocation5 + $0x3a0] sm:$0xff]  ;;  %v1395_v18 = vpack.c.bf16 %v279_v11, %v275_v10  ;;  %v274_v19 = vld [vmem:[#allocation5 + $0x90] sm:$0xff] }
  0xa3   : > { %v373_v24 = vld [vmem:[#allocation5 + $0x3a8] sm:$0xff]  ;;  %1374 = vmatpush1.bf16.msra.mxu1 %v1373_v17  ;;  %v635_v40 = vld [vmem:[#allocation5 + $0x700] sm:$0xff]  ;;  %v1381_v42 = vpack.c.bf16 %v372_v34, %v368_v33  ;;  %v2260_v17 = vld [vmem:[%s2236_s11 + $0x10] sm:$0xff] }
  0xa4   : > { %v636_v30 = vld [vmem:[#allocation5 + $0x708] sm:$0xff]  ;;  %1376 = vmatprep.subr.bf16.mxu1 %v1375_v20  ;;  %v1379_v32 = vpack.c.bf16 %v373_v24, %v369_v23  ;;  %1494 = vmatpush1.bf16.msra.mxu0 %v1493_v25  ;;  %v639_v41 = vld [vmem:[#allocation5 + $0x720] sm:$0xff]  ;;  %v278_v20 = vld [vmem:[#allocation5 + $0xb0] sm:$0xff] }
  0xa5   : > { %v640_v31 = vld [vmem:[#allocation5 + $0x728] sm:$0xff]  ;;  %1496 = vmatprep.subr.bf16.mxu0 %v1495_v26  ;;  %v376_v46 = vld [vmem:[#allocation5 + $0x3c0] sm:$0xff]  ;;  %v1501_v50 = vpack.c.bf16 %v639_v41, %v635_v40  ;;  %v283_v21 = vld [vmem:[#allocation5 + $0xd8] sm:$0xff]  ;;  %v1397_v24 = vpack.c.bf16 %v278_v20, %v274_v19 }
  0xa6   : > { %v377_v35 = vld [vmem:[#allocation5 + $0x3c8] sm:$0xff]  ;;  %v1499_v39 = vpack.c.bf16 %v640_v31, %v636_v30  ;;  %v380_v47 = vld [vmem:[#allocation5 + $0x3e0] sm:$0xff]  ;;  %v287_v22 = vld [vmem:[#allocation5 + $0xf8] sm:$0xff] }
  0xa7   : > { %v381_v36 = vld [vmem:[#allocation5 + $0x3e8] sm:$0xff]  ;;  %1378 = vmatpush1.bf16.msra.mxu1 %v1377_v29  ;;  %v643_v52 = vld [vmem:[#allocation5 + $0x740] sm:$0xff]  ;;  %v1385_v54 = vpack.c.bf16 %v380_v47, %v376_v46  ;;  %v1399_v25 = vpack.c.bf16 %v287_v22, %v283_v21  ;;  %v282_v26 = vld [vmem:[#allocation5 + $0xd0] sm:$0xff] }
  0xa8   : > { %v644_v43 = vld [vmem:[#allocation5 + $0x748] sm:$0xff]  ;;  %1380 = vmatprep.subr.bf16.mxu1 %v1379_v32  ;;  %v1383_v45 = vpack.c.bf16 %v381_v36, %v377_v35  ;;  %1498 = vmatpush1.bf16.msra.mxu0 %v1497_v37  ;;  %v647_v53 = vld [vmem:[#allocation5 + $0x760] sm:$0xff]  ;;  %v286_v27 = vld [vmem:[#allocation5 + $0xf0] sm:$0xff] }
  0xa9   : > { %v648_v44 = vld [vmem:[#allocation5 + $0x768] sm:$0xff]  ;;  %1500 = vmatprep.subr.bf16.mxu0 %v1499_v39  ;;  %v1505_v62 = vpack.c.bf16 %v647_v53, %v643_v52  ;;  %v651_v0 = vld [vmem:[#allocation5 + $0x780] sm:$0xff]  ;;  %v291_v28 = vld [vmem:[#allocation5 + $0x118] sm:$0xff]  ;;  %v1401_v30 = vpack.c.bf16 %v286_v27, %v282_v26 }
  0xaa   : > { %v1503_v51 = vpack.c.bf16 %v648_v44, %v644_v43  ;;  %v652_v55 = vld [vmem:[#allocation5 + $0x788] sm:$0xff]  ;;  %v655_v1 = vld [vmem:[#allocation5 + $0x7a0] sm:$0xff]  ;;  %v295_v29 = vld [vmem:[#allocation5 + $0x138] sm:$0xff] }
  0xab   : > { %1382 = vmatpush1.bf16.msra.mxu1 %v1381_v42  ;;  %v656_v56 = vld [vmem:[#allocation5 + $0x7a8] sm:$0xff]  ;;  %v2252_v2 = vld [vmem:[%s2236_s11] sm:$0xff]  ;;  %v1509_v12 = vpack.c.bf16 %v655_v1, %v651_v0  ;;  %v1403_v31 = vpack.c.bf16 %v295_v29, %v291_v28  ;;  %v290_v32 = vld [vmem:[#allocation5 + $0x110] sm:$0xff] }
  0xac   : > { %1384 = vmatprep.subr.bf16.mxu1 %v1383_v45  ;;  %1502 = vmatpush1.bf16.msra.mxu0 %v1501_v50  ;;  %v1507_v63 = vpack.c.bf16 %v656_v56, %v652_v55  ;;  %v660_v4 = vld [vmem:[#allocation5 + $0x7c8] sm:$0xff]  ;;  %v659_v14 = vld [vmem:[#allocation5 + $0x7c0] sm:$0xff]  ;;  %v294_v33 = vld [vmem:[#allocation5 + $0x130] sm:$0xff] }
  0xad   : > { %1504 = vmatprep.subr.bf16.mxu0 %v1503_v51  ;;  %v664_v5 = vld [vmem:[#allocation5 + $0x7e8] sm:$0xff]  ;;  %v663_v15 = vld [vmem:[#allocation5 + $0x7e0] sm:$0xff]  ;;  %v299_v34 = vld [vmem:[#allocation5 + $0x158] sm:$0xff]  ;;  %v1405_v36 = vpack.c.bf16 %v294_v33, %v290_v32 }
  0xae   : > { %v1511_v13 = vpack.c.bf16 %v664_v5, %v660_v4  ;;  %v1513_v23 = vpack.c.bf16 %v663_v15, %v659_v14  ;;  %v303_v35 = vld [vmem:[#allocation5 + $0x178] sm:$0xff]  ;;  %v298_v39 = vld [vmem:[#allocation5 + $0x150] sm:$0xff]  ;;  %v886_v49 = vld [vmem:[#allocation7 + $0x8] sm:$0xff] }
  0xaf   : > { %1386 = vmatpush1.bf16.msra.mxu1 %v1385_v54  ;;  %v1407_v37 = vpack.c.bf16 %v303_v35, %v299_v34  ;;  %v302_v40 = vld [vmem:[#allocation5 + $0x170] sm:$0xff]  ;;  %v307_v41 = vld [vmem:[#allocation5 + $0x198] sm:$0xff]  ;;  %v885_v53 = vld [vmem:[#allocation7] sm:$0xff] }
  0xb0   : > { %1388 = vmatprep.subr.bf16.mxu1 %v1387_v57  ;;  %1506 = vmatpush1.bf16.msra.mxu0 %v1505_v62  ;;  %v311_v42 = vld [vmem:[#allocation5 + $0x1b8] sm:$0xff]  ;;  %v1409_v43 = vpack.c.bf16 %v302_v40, %v298_v39  ;;  %v306_v45 = vld [vmem:[#allocation5 + $0x190] sm:$0xff]  ;;  %v890_v58 = vld [vmem:[#allocation7 + $0x28] sm:$0xff] }
  0xb1   : > { %1508 = vmatprep.subr.bf16.mxu0 %v1507_v63  ;;  %v1411_v44 = vpack.c.bf16 %v311_v42, %v307_v41  ;;  %v310_v46 = vld [vmem:[#allocation5 + $0x1b0] sm:$0xff]  ;;  %v315_v47 = vld [vmem:[#allocation5 + $0x1d8] sm:$0xff]  ;;  %v889_v60 = vld [vmem:[#allocation7 + $0x20] sm:$0xff] }
  0xb2   : > { %449 = vmatmul.mubr.f32.vlgmr.msra.gmra.mrb[0].mxu1 %v2252_v2  ;;  %v319_v48 = vld [vmem:[#allocation5 + $0x1f8] sm:$0xff]  ;;  %v314_v50 = vld [vmem:[#allocation5 + $0x1d0] sm:$0xff]  ;;  %v1413_v55 = vpack.c.bf16 %v310_v46, %v306_v45  ;;  %v894_v0 = vld [vmem:[#allocation7 + $0x48] sm:$0xff] }
  0xb3   : > { %1390 = vmatpush1.bf16.msra.mxu1 %v1389_v3  ;;  %454 = vmatprep.mubr.f32.mxu1 %v2255_v9  ;;  %v318_v51 = vld [vmem:[#allocation5 + $0x1f0] sm:$0xff]  ;;  %v888_v52 = vld [vmem:[#allocation7 + $0x18] sm:$0xff]  ;;  %v1415_v61 = vpack.c.bf16 %v319_v48, %v315_v47  ;;  %v893_v10 = vld [vmem:[#allocation7 + $0x40] sm:$0xff] }
  0xb4   : > { %1392 = vmatprep.subr.bf16.mxu1 %v1391_v6  ;;  %1510 = vmatpush1.bf16.msra.mxu0 %v1509_v12  ;;  %v887_v54 = vld [vmem:[#allocation7 + $0x10] sm:$0xff]  ;;  %v1579_v56 = vpack.c.bf16 %v888_v52, %v886_v49  ;;  %v892_v59 = vld [vmem:[#allocation7 + $0x38] sm:$0xff]  ;;  %v1417_v6 = vpack.c.bf16 %v318_v51, %v314_v50  ;;  %v898_v14 = vld [vmem:[#allocation7 + $0x68] sm:$0xff] }
  0xb5   : > { %1512 = vmatprep.subr.bf16.mxu0 %v1511_v13  ;;  %v1581_v57 = vpack.c.bf16 %v887_v54, %v885_v53  ;;  %v1583_v62 = vpack.c.bf16 %v892_v59, %v890_v58  ;;  %v891_v63 = vld [vmem:[#allocation7 + $0x30] sm:$0xff]  ;;  %v896_v1 = vld [vmem:[#allocation7 + $0x58] sm:$0xff]  ;;  %v902_v27 = vld [vmem:[#allocation7 + $0x88] sm:$0xff] }
  0xb6   : > { %455 = vmatmul.mubr.f32.gmra.mrb[2].mxu1 %v2260_v17  ;;  %v323_v3 = vld [vmem:[#allocation5 + $0x218] sm:$0xff]  ;;  %v1585_v5 = vpack.c.bf16 %v891_v63, %v889_v60  ;;  %v322_v7 = vld [vmem:[#allocation5 + $0x210] sm:$0xff]  ;;  %v1587_v8 = vpack.c.bf16 %v896_v1, %v894_v0  ;;  %v901_v35 = vld [vmem:[#allocation7 + $0x80] sm:$0xff] }
  0xb7   : > { %1394 = vmatpush1.bf16.msra.mxu1 %v1393_v16  ;;  %525 = vmatprep.mubr.f32.mxu1 %v2247_v38  ;;  %v327_v4 = vld [vmem:[#allocation5 + $0x238] sm:$0xff]  ;;  %v895_v11 = vld [vmem:[#allocation7 + $0x50] sm:$0xff]  ;;  %v906_v40 = vld [vmem:[#allocation7 + $0xa8] sm:$0xff] }
  0xb8   : > { %1396 = vmatprep.subr.bf16.mxu1 %v1395_v18  ;;  %1514 = vmatpush1.bf16.msra.mxu0 %v1513_v23  ;;  %v1419_v12 = vpack.c.bf16 %v327_v4, %v323_v3  ;;  %v326_v13 = vld [vmem:[#allocation5 + $0x230] sm:$0xff]  ;;  %v900_v15 = vld [vmem:[#allocation7 + $0x78] sm:$0xff]  ;;  %v1589_v19 = vpack.c.bf16 %v895_v11, %v893_v10  ;;  %v897_v23 = vld [vmem:[#allocation7 + $0x60] sm:$0xff] }
  0xb9   : > { %1580 = vmatprep.subr.bf16.mxu0 %v1579_v56  ;;  %v331_v16 = vld [vmem:[#allocation5 + $0x258] sm:$0xff]  ;;  %v1421_v20 = vpack.c.bf16 %v326_v13, %v322_v7  ;;  %v330_v21 = vld [vmem:[#allocation5 + $0x250] sm:$0xff]  ;;  %v1591_v22 = vpack.c.bf16 %v900_v15, %v898_v14  ;;  %v905_v48 = vld [vmem:[#allocation7 + $0xa0] sm:$0xff] }
  0xba   : > { %v335_v18 = vld [vmem:[#allocation5 + $0x278] sm:$0xff]  ;;  %v334_v26 = vld [vmem:[#allocation5 + $0x270] sm:$0xff]  ;;  %v910_v52 = vld [vmem:[#allocation7 + $0xc8] sm:$0xff] }
  0xbb   : > { %1398 = vmatpush1.bf16.msra.mxu1 %v1397_v24  ;;  %732 = vmatmul.mubr.f32.vlgmr.msra.gmra.mrb[0].mxu0 %v2252_v2  ;;  %v899_v24 = vld [vmem:[#allocation7 + $0x70] sm:$0xff]  ;;  %v904_v28 = vld [vmem:[#allocation7 + $0x98] sm:$0xff]  ;;  %v1425_v32 = vpack.c.bf16 %v334_v26, %v330_v21  ;;  %v909_v60 = vld [vmem:[#allocation7 + $0xc0] sm:$0xff] }
  0xbc   : > { %1400 = vmatprep.subr.bf16.mxu1 %v1399_v25  ;;  %737 = vmatprep.mubr.f32.mxu0 %v2255_v9  ;;  %v1423_v25 = vpack.c.bf16 %v335_v18, %v331_v16  ;;  %v339_v29 = vld [vmem:[#allocation5 + $0x298] sm:$0xff]  ;;  %v338_v33 = vld [vmem:[#allocation5 + $0x290] sm:$0xff]  ;;  %v1595_v34 = vpack.c.bf16 %v904_v28, %v902_v27  ;;  %v914_v0 = vld [vmem:[#allocation7 + $0xe8] sm:$0xff] }
  0xbd   : > { %1582 = vmatpush1.bf16.msra.mxu0 %v1581_v57  ;;  %v342_v39 = vld [vmem:[#allocation5 + $0x2b0] sm:$0xff]  ;;  %v908_v41 = vld [vmem:[#allocation7 + $0xb8] sm:$0xff] }
  0xbe   : > { %1584 = vmatprep.subr.bf16.mxu0 %v1583_v62  ;;  %v347_v42 = vld [vmem:[#allocation5 + $0x2d8] sm:$0xff]  ;;  %v1429_v45 = vpack.c.bf16 %v342_v39, %v338_v33  ;;  %v346_v46 = vld [vmem:[#allocation5 + $0x2d0] sm:$0xff]  ;;  %v1599_v47 = vpack.c.bf16 %v908_v41, %v906_v40 }
  0xbf   : > { %1402 = vmatpush1.bf16.msra.mxu1 %v1401_v30  ;;  %738 = vmatmul.mubr.f32.gmra.mrb[2].mxu0 %v2260_v17  ;;  %v343_v30 = vld [vmem:[#allocation5 + $0x2b8] sm:$0xff]  ;;  %v907_v49 = vld [vmem:[#allocation7 + $0xb0] sm:$0xff] }
  0xc0   : > { %1404 = vmatprep.subr.bf16.mxu1 %v1403_v31  ;;  %v1593_v31 = vpack.c.bf16 %v899_v24, %v897_v23  ;;  %v350_v51 = vld [vmem:[#allocation5 + $0x2f0] sm:$0xff]  ;;  %v912_v53 = vld [vmem:[#allocation7 + $0xd8] sm:$0xff]  ;;  %v1601_v56 = vpack.c.bf16 %v907_v49, %v905_v48 }
  0xc1   : > { %1586 = vmatpush1.bf16.msra.mxu0 %v1585_v5  ;;  %v355_v54 = vld [vmem:[#allocation5 + $0x318] sm:$0xff]  ;;  %v1433_v57 = vpack.c.bf16 %v350_v51, %v346_v46  ;;  %v354_v58 = vld [vmem:[#allocation5 + $0x310] sm:$0xff]  ;;  %v1603_v59 = vpack.c.bf16 %v912_v53, %v910_v52 }
  0xc2   : > { %1588 = vmatprep.subr.bf16.mxu0 %v1587_v8  ;;  %v358_v63 = vld [vmem:[#allocation5 + $0x330] sm:$0xff]  ;;  %v916_v1 = vld [vmem:[#allocation7 + $0xf8] sm:$0xff]  ;;  %v913_v8 = vld [vmem:[#allocation7 + $0xe0] sm:$0xff] }
  0xc3   : > { %1406 = vmatpush1.bf16.msra.mxu1 %v1405_v36  ;;  %v903_v36 = vld [vmem:[#allocation7 + $0x90] sm:$0xff]  ;;  %v363_v3 = vld [vmem:[#allocation5 + $0x358] sm:$0xff]  ;;  %v1607_v7 = vpack.c.bf16 %v916_v1, %v914_v0 }
  0xc4   : > { %1408 = vmatprep.subr.bf16.mxu1 %v1407_v37  ;;  %v1427_v37 = vpack.c.bf16 %v343_v30, %v339_v29  ;;  %v367_v4 = vld [vmem:[#allocation5 + $0x378] sm:$0xff]  ;;  %v915_v10 = vld [vmem:[#allocation7 + $0xf0] sm:$0xff] }
  0xc5   : > { %1590 = vmatpush1.bf16.msra.mxu0 %v1589_v19  ;;  %v1439_v11 = vpack.c.bf16 %v367_v4, %v363_v3  ;;  %v366_v13 = vld [vmem:[#allocation5 + $0x370] sm:$0xff]  ;;  %v371_v14 = vld [vmem:[#allocation5 + $0x398] sm:$0xff]  ;;  %v1609_v16 = vpack.c.bf16 %v915_v10, %v913_v8 }
  0xc6   : > { %1592 = vmatprep.subr.bf16.mxu0 %v1591_v22  ;;  %v375_v15 = vld [vmem:[#allocation5 + $0x3b8] sm:$0xff]  ;;  %v374_v21 = vld [vmem:[#allocation5 + $0x3b0] sm:$0xff] }
  0xc7   : > { %1410 = vmatpush1.bf16.msra.mxu1 %v1409_v43  ;;  %v351_v43 = vld [vmem:[#allocation5 + $0x2f8] sm:$0xff]  ;;  %v1443_v19 = vpack.c.bf16 %v375_v15, %v371_v14  ;;  %v378_v26 = vld [vmem:[#allocation5 + $0x3d0] sm:$0xff] }
  0xc8   : > { %1412 = vmatprep.subr.bf16.mxu1 %v1411_v44  ;;  %v1597_v44 = vpack.c.bf16 %v903_v36, %v901_v35  ;;  %v1431_v50 = vpack.c.bf16 %v351_v43, %v347_v42  ;;  %v379_v22 = vld [vmem:[#allocation5 + $0x3d8] sm:$0xff]  ;;  %v382_v27 = vld [vmem:[#allocation5 + $0x3f0] sm:$0xff] }
  0xc9   : > { %1594 = vmatpush1.bf16.msra.mxu0 %v1593_v31  ;;  %v383_v23 = vld [vmem:[#allocation5 + $0x3f8] sm:$0xff]  ;;  %v1449_v30 = vpack.c.bf16 %v382_v27, %v378_v26  ;;  %v545_v33 = vld [vmem:[#allocation5 + $0x430] sm:$0xff] }
  0xca   : > { %1596 = vmatprep.subr.bf16.mxu0 %v1595_v34  ;;  %v542_v28 = vld [vmem:[#allocation5 + $0x418] sm:$0xff]  ;;  %v549_v39 = vld [vmem:[#allocation5 + $0x450] sm:$0xff] }
  0xcb   : > { %1414 = vmatpush1.bf16.msra.mxu1 %v1413_v55  ;;  %v359_v55 = vld [vmem:[#allocation5 + $0x338] sm:$0xff]  ;;  %v553_v40 = vld [vmem:[#allocation5 + $0x470] sm:$0xff] }
  0xcc   : > { %1416 = vmatprep.subr.bf16.mxu1 %v1415_v61  ;;  %v911_v61 = vld [vmem:[#allocation7 + $0xd0] sm:$0xff]  ;;  %v1435_v62 = vpack.c.bf16 %v359_v55, %v355_v54  ;;  %v546_v29 = vld [vmem:[#allocation5 + $0x438] sm:$0xff]  ;;  %v1521_v43 = vpack.c.bf16 %v553_v40, %v549_v39 }
  0xcd   : > { %1598 = vmatpush1.bf16.msra.mxu0 %v1597_v44  ;;  %v1605_v5 = vpack.c.bf16 %v911_v61, %v909_v60  ;;  %v1515_v31 = vpack.c.bf16 %v546_v29, %v542_v28  ;;  %v550_v34 = vld [vmem:[#allocation5 + $0x458] sm:$0xff]  ;;  %v561_v46 = vld [vmem:[#allocation5 + $0x4b0] sm:$0xff] }
  0xce   : > { %1600 = vmatprep.subr.bf16.mxu0 %v1599_v47  ;;  %v554_v35 = vld [vmem:[#allocation5 + $0x478] sm:$0xff]  ;;  %v565_v51 = vld [vmem:[#allocation5 + $0x4d0] sm:$0xff] }
  0xcf   : > { %1418 = vmatpush1.bf16.msra.mxu1 %v1417_v6  ;;  %v1437_v6 = vpack.c.bf16 %v358_v63, %v354_v58  ;;  %v558_v41 = vld [vmem:[#allocation5 + $0x498] sm:$0xff]  ;;  %v569_v52 = vld [vmem:[#allocation5 + $0x4f0] sm:$0xff] }
  0xd0   : > { %1420 = vmatprep.subr.bf16.mxu1 %v1419_v12  ;;  %v362_v12 = vld [vmem:[#allocation5 + $0x350] sm:$0xff]  ;;  %v562_v42 = vld [vmem:[#allocation5 + $0x4b8] sm:$0xff]  ;;  %v1529_v55 = vpack.c.bf16 %v569_v52, %v565_v51 }
  0xd1   : > { %1602 = vmatpush1.bf16.msra.mxu0 %v1601_v56  ;;  %v1441_v18 = vpack.c.bf16 %v366_v13, %v362_v12  ;;  %v1523_v44 = vpack.c.bf16 %v562_v42, %v558_v41  ;;  %v566_v47 = vld [vmem:[#allocation5 + $0x4d8] sm:$0xff]  ;;  %v577_v58 = vld [vmem:[#allocation5 + $0x530] sm:$0xff] }
  0xd2   : > { %1604 = vmatprep.subr.bf16.mxu0 %v1603_v59  ;;  %v570_v48 = vld [vmem:[#allocation5 + $0x4f8] sm:$0xff]  ;;  %v581_v63 = vld [vmem:[#allocation5 + $0x550] sm:$0xff] }
  0xd3   : > { %1422 = vmatpush1.bf16.msra.mxu1 %v1421_v20  ;;  %v370_v20 = vld [vmem:[#allocation5 + $0x390] sm:$0xff]  ;;  %v574_v53 = vld [vmem:[#allocation5 + $0x518] sm:$0xff] }
  0xd4   : > { %1424 = vmatprep.subr.bf16.mxu1 %v1423_v25  ;;  %v1445_v24 = vpack.c.bf16 %v374_v21, %v370_v20  ;;  %v1447_v25 = vpack.c.bf16 %v383_v23, %v379_v22  ;;  %v578_v54 = vld [vmem:[#allocation5 + $0x538] sm:$0xff]  ;;  %v589_v4 = vld [vmem:[#allocation5 + $0x590] sm:$0xff] }
  0xd5   : > { %1606 = vmatpush1.bf16.msra.mxu0 %v1605_v5  ;;  %v1531_v56 = vpack.c.bf16 %v578_v54, %v574_v53  ;;  %v582_v59 = vld [vmem:[#allocation5 + $0x558] sm:$0xff]  ;;  %v918_v5 = vld [vmem:[#allocation7 + $0x108] sm:$0xff]  ;;  %v593_v8 = vld [vmem:[#allocation5 + $0x5b0] sm:$0xff] }
  0xd6   : > { %1608 = vmatprep.subr.bf16.mxu0 %v1607_v7  ;;  %v586_v60 = vld [vmem:[#allocation5 + $0x578] sm:$0xff]  ;;  %v919_v12 = vld [vmem:[#allocation7 + $0x110] sm:$0xff] }
  0xd7   : > { %1426 = vmatpush1.bf16.msra.mxu1 %v1425_v32  ;;  %v541_v32 = vld [vmem:[#allocation5 + $0x410] sm:$0xff]  ;;  %v590_v0 = vld [vmem:[#allocation5 + $0x598] sm:$0xff] }
  0xd8   : > { %1428 = vmatprep.subr.bf16.mxu1 %v1427_v37  ;;  %v1517_v36 = vpack.c.bf16 %v545_v33, %v541_v32  ;;  %v1519_v37 = vpack.c.bf16 %v554_v35, %v550_v34  ;;  %v594_v1 = vld [vmem:[#allocation5 + $0x5b8] sm:$0xff]  ;;  %v601_v22 = vld [vmem:[#allocation5 + $0x5f0] sm:$0xff] }
  0xd9   : > { %1610 = vmatpush1.bf16.msra.mxu0 %v1609_v16  ;;  %v1539_v7 = vpack.c.bf16 %v594_v1, %v590_v0  ;;  %v598_v13 = vld [vmem:[#allocation5 + $0x5d8] sm:$0xff]  ;;  %v1541_v16 = vpack.c.bf16 %v593_v8, %v589_v4  ;;  %v609_v34 = vld [vmem:[#allocation5 + $0x630] sm:$0xff]  ;;  %v938_v4 = vld [vmem:[#allocation7 + $0x1a8] sm:$0xff] }
  0xda   : > { %v602_v14 = vld [vmem:[#allocation5 + $0x5f8] sm:$0xff] }
  0xdb   : > { %1430 = vmatpush1.bf16.msra.mxu1 %v1429_v45  ;;  %v557_v45 = vld [vmem:[#allocation5 + $0x490] sm:$0xff]  ;;  %v924_v20 = vld [vmem:[#allocation7 + $0x138] sm:$0xff]  ;;  %v1543_v21 = vpack.c.bf16 %v602_v14, %v598_v13 }
  0xdc   : > { %1432 = vmatprep.subr.bf16.mxu1 %v1431_v50  ;;  %v1525_v49 = vpack.c.bf16 %v561_v46, %v557_v45  ;;  %v1527_v50 = vpack.c.bf16 %v570_v48, %v566_v47  ;;  %v606_v26 = vld [vmem:[#allocation5 + $0x618] sm:$0xff]  ;;  %v617_v47 = vld [vmem:[#allocation5 + $0x670] sm:$0xff] }
  0xdd   : > { %v610_v27 = vld [vmem:[#allocation5 + $0x638] sm:$0xff] }
  0xde   : > { %v928_v32 = vld [vmem:[#allocation7 + $0x158] sm:$0xff]  ;;  %v1547_v33 = vpack.c.bf16 %v610_v27, %v606_v26 }
  0xdf   : > { %1434 = vmatpush1.bf16.msra.mxu1 %v1433_v57  ;;  %v573_v57 = vld [vmem:[#allocation5 + $0x510] sm:$0xff]  ;;  %v614_v39 = vld [vmem:[#allocation5 + $0x658] sm:$0xff] }
  0xe0   : > { %1436 = vmatprep.subr.bf16.mxu1 %v1435_v62  ;;  %v1533_v61 = vpack.c.bf16 %v577_v58, %v573_v57  ;;  %v1535_v62 = vpack.c.bf16 %v586_v60, %v582_v59  ;;  %v618_v40 = vld [vmem:[#allocation5 + $0x678] sm:$0xff]  ;;  %v625_v59 = vld [vmem:[#allocation5 + $0x6b0] sm:$0xff] }
  0xe1   : > { %v932_v45 = vld [vmem:[#allocation7 + $0x178] sm:$0xff]  ;;  %v1551_v46 = vpack.c.bf16 %v618_v40, %v614_v39 }
  0xe2   : > { %v622_v51 = vld [vmem:[#allocation5 + $0x698] sm:$0xff] }
  0xe3   : > { %1438 = vmatpush1.bf16.msra.mxu1 %v1437_v6  ;;  %v920_v6 = vld [vmem:[#allocation7 + $0x118] sm:$0xff] }
  0xe4   : > { %1440 = vmatprep.subr.bf16.mxu1 %v1439_v11  ;;  %v1611_v10 = vpack.c.bf16 %v920_v6, %v918_v5  ;;  %v917_v11 = vld [vmem:[#allocation7 + $0x100] sm:$0xff]  ;;  %v626_v52 = vld [vmem:[#allocation5 + $0x6b8] sm:$0xff] }
  0xe5   : > { %v1613_v15 = vpack.c.bf16 %v919_v12, %v917_v11  ;;  %v936_v57 = vld [vmem:[#allocation7 + $0x198] sm:$0xff]  ;;  %v1555_v58 = vpack.c.bf16 %v626_v52, %v622_v51  ;;  %v939_v11 = vld [vmem:[#allocation7 + $0x1b0] sm:$0xff]  ;;  %v950_v52 = vld [vmem:[#allocation7 + $0x208] sm:$0xff] }
  0xe6   : > { %1612 = vmatprep.subr.bf16.mxu0 %v1611_v10  ;;  %v940_v5 = vld [vmem:[#allocation7 + $0x1b8] sm:$0xff]  ;;  %v937_v10 = vld [vmem:[#allocation7 + $0x1a0] sm:$0xff] }
  0xe7   : > { %1442 = vmatpush1.bf16.msra.mxu1 %v1441_v18  ;;  %v597_v18 = vld [vmem:[#allocation5 + $0x5d0] sm:$0xff]  ;;  %1614 = vmatpush1.bf16.msra.mxu0 %v1613_v15  ;;  %v1631_v8 = vpack.c.bf16 %v940_v5, %v938_v4  ;;  %v638_v12 = vld [vmem:[#allocation5 + $0x718] sm:$0xff]  ;;  %v1633_v14 = vpack.c.bf16 %v939_v11, %v937_v10 }
  0xe8   : > { %1444 = vmatprep.subr.bf16.mxu1 %v1443_v19  ;;  %v922_v19 = vld [vmem:[#allocation7 + $0x128] sm:$0xff]  ;;  %v1545_v29 = vpack.c.bf16 %v601_v22, %v597_v18  ;;  %v642_v13 = vld [vmem:[#allocation5 + $0x738] sm:$0xff] }
  0xe9   : > { %v1615_v23 = vpack.c.bf16 %v924_v20, %v922_v19  ;;  %v942_v18 = vld [vmem:[#allocation7 + $0x1c8] sm:$0xff]  ;;  %v944_v19 = vld [vmem:[#allocation7 + $0x1d8] sm:$0xff]  ;;  %v1563_v20 = vpack.c.bf16 %v642_v13, %v638_v12  ;;  %v949_v12 = vld [vmem:[#allocation7 + $0x200] sm:$0xff] }
  0xea   : > { %v1635_v22 = vpack.c.bf16 %v944_v19, %v942_v18  ;;  %v650_v26 = vld [vmem:[#allocation5 + $0x778] sm:$0xff]  ;;  %v951_v13 = vld [vmem:[#allocation7 + $0x210] sm:$0xff] }
  0xeb   : > { %1446 = vmatpush1.bf16.msra.mxu1 %v1445_v24  ;;  %v921_v24 = vld [vmem:[#allocation7 + $0x120] sm:$0xff]  ;;  %1616 = vmatprep.subr.bf16.mxu0 %v1615_v23  ;;  %v658_v39 = vld [vmem:[#allocation5 + $0x7b8] sm:$0xff] }
  0xec   : > { %1448 = vmatprep.subr.bf16.mxu1 %v1447_v25  ;;  %v923_v25 = vld [vmem:[#allocation7 + $0x130] sm:$0xff]  ;;  %v941_v23 = vld [vmem:[#allocation7 + $0x1c0] sm:$0xff] }
  0xed   : > { %v1617_v28 = vpack.c.bf16 %v923_v25, %v921_v24  ;;  %v943_v24 = vld [vmem:[#allocation7 + $0x1d0] sm:$0xff]  ;;  %v646_v25 = vld [vmem:[#allocation5 + $0x758] sm:$0xff] }
  0xee   : > { %v1637_v27 = vpack.c.bf16 %v943_v24, %v941_v23 }
  0xef   : > { %1450 = vmatpush1.bf16.msra.mxu1 %v1449_v30  ;;  %v605_v30 = vld [vmem:[#allocation5 + $0x610] sm:$0xff]  ;;  %1618 = vmatpush1.bf16.msra.mxu0 %v1617_v28 }
  0xf0   : > { %1516 = vmatprep.subr.bf16.mxu1 %v1515_v31  ;;  %v926_v31 = vld [vmem:[#allocation7 + $0x148] sm:$0xff]  ;;  %v1549_v42 = vpack.c.bf16 %v609_v34, %v605_v30 }
  0xf1   : > { %v1619_v35 = vpack.c.bf16 %v928_v32, %v926_v31  ;;  %v946_v30 = vld [vmem:[#allocation7 + $0x1e8] sm:$0xff]  ;;  %v948_v31 = vld [vmem:[#allocation7 + $0x1f8] sm:$0xff]  ;;  %v1567_v32 = vpack.c.bf16 %v650_v26, %v646_v25  ;;  %v953_v25 = vld [vmem:[#allocation7 + $0x220] sm:$0xff] }
  0xf2   : > { %526 = vmatmul.mubr.f32.vlgmr.msra.gmra.mrb[4].mxu1 %v2252_v2  ;;  %v1639_v34 = vpack.c.bf16 %v948_v31, %v946_v30  ;;  %v955_v26 = vld [vmem:[#allocation7 + $0x230] sm:$0xff] }
  0xf3   : > { %1518 = vmatpush1.bf16.msra.mxu1 %v1517_v36  ;;  %531 = vmatprep.mubr.f32.mxu1 %v2255_v9  ;;  %v925_v36 = vld [vmem:[#allocation7 + $0x140] sm:$0xff] }
  0xf4   : > { %1520 = vmatprep.subr.bf16.mxu1 %v1519_v37  ;;  %v927_v37 = vld [vmem:[#allocation7 + $0x150] sm:$0xff]  ;;  %1620 = vmatprep.subr.bf16.mxu0 %v1619_v35  ;;  %v945_v35 = vld [vmem:[#allocation7 + $0x1e0] sm:$0xff] }
  0xf5   : > { %v1621_v41 = vpack.c.bf16 %v927_v37, %v925_v36  ;;  %v947_v36 = vld [vmem:[#allocation7 + $0x1f0] sm:$0xff]  ;;  %v654_v37 = vld [vmem:[#allocation5 + $0x798] sm:$0xff] }
  0xf6   : > { %532 = vmatmul.mubr.f32.gmra.mrb[6].mxu1 %v2260_v17  ;;  %v1641_v40 = vpack.c.bf16 %v947_v36, %v945_v35  ;;  %v959_v35 = vld [vmem:[#allocation7 + $0x250] sm:$0xff]  ;;  %v962_v36 = vld [vmem:[#allocation7 + $0x268] sm:$0xff] }
  0xf7   : > { %1522 = vmatpush1.bf16.msra.mxu1 %v1521_v43  ;;  %808 = vmatprep.mubr.f32.mxu1 %v2247_v38  ;;  %v585_v38 = vld [vmem:[#allocation5 + $0x570] sm:$0xff] }
  0xf8   : > { %1524 = vmatprep.subr.bf16.mxu1 %v1523_v44  ;;  %v1537_v3 = vpack.c.bf16 %v585_v38, %v581_v63  ;;  %v613_v43 = vld [vmem:[#allocation5 + $0x650] sm:$0xff]  ;;  %1622 = vmatpush1.bf16.msra.mxu0 %v1621_v41  ;;  %v930_v44 = vld [vmem:[#allocation7 + $0x168] sm:$0xff]  ;;  %v630_v63 = vld [vmem:[#allocation5 + $0x6d8] sm:$0xff] }
  0xf9   : > { %v1623_v48 = vpack.c.bf16 %v932_v45, %v930_v44  ;;  %v1553_v54 = vpack.c.bf16 %v617_v47, %v613_v43  ;;  %v634_v38 = vld [vmem:[#allocation5 + $0x6f8] sm:$0xff]  ;;  %v653_v43 = vld [vmem:[#allocation5 + $0x790] sm:$0xff] }
  0xfa   : > { %v1559_v6 = vpack.c.bf16 %v634_v38, %v630_v63  ;;  %v657_v44 = vld [vmem:[#allocation5 + $0x7b0] sm:$0xff]  ;;  %v662_v45 = vld [vmem:[#allocation5 + $0x7d8] sm:$0xff] }
  0xfb   : > { %1526 = vmatpush1.bf16.msra.mxu1 %v1525_v49  ;;  %v929_v49 = vld [vmem:[#allocation7 + $0x160] sm:$0xff]  ;;  %1624 = vmatprep.subr.bf16.mxu0 %v1623_v48  ;;  %v1573_v47 = vpack.c.bf16 %v657_v44, %v653_v43  ;;  %v966_v43 = vld [vmem:[#allocation7 + $0x288] sm:$0xff]  ;;  %v968_v44 = vld [vmem:[#allocation7 + $0x298] sm:$0xff] }
  0xfc   : > { %1528 = vmatprep.subr.bf16.mxu1 %v1527_v50  ;;  %v931_v50 = vld [vmem:[#allocation7 + $0x170] sm:$0xff] }
  0xfd   : > { %v1625_v53 = vpack.c.bf16 %v931_v50, %v929_v49  ;;  %v661_v49 = vld [vmem:[#allocation5 + $0x7d0] sm:$0xff] }
  0xfe   : > { %v665_v50 = vld [vmem:[#allocation5 + $0x7f0] sm:$0xff] }
  0xff   : > { %1530 = vmatpush1.bf16.msra.mxu1 %v1529_v55  ;;  %v621_v55 = vld [vmem:[#allocation5 + $0x690] sm:$0xff]  ;;  %1626 = vmatpush1.bf16.msra.mxu0 %v1625_v53  ;;  %v1577_v51 = vpack.c.bf16 %v665_v50, %v661_v49  ;;  %v952_v53 = vld [vmem:[#allocation7 + $0x218] sm:$0xff]  ;;  %v970_v49 = vld [vmem:[#allocation7 + $0x2a8] sm:$0xff] }
 0x100   : > { %1532 = vmatprep.subr.bf16.mxu1 %v1531_v56  ;;  %v934_v56 = vld [vmem:[#allocation7 + $0x188] sm:$0xff]  ;;  %v1557_v1 = vpack.c.bf16 %v625_v59, %v621_v55  ;;  %v972_v50 = vld [vmem:[#allocation7 + $0x2b8] sm:$0xff] }
 0x101   : > { %v1627_v60 = vpack.c.bf16 %v936_v57, %v934_v56 }
 0x103   : > { %1534 = vmatpush1.bf16.msra.mxu1 %v1533_v61  ;;  %v933_v61 = vld [vmem:[#allocation7 + $0x180] sm:$0xff]  ;;  %1628 = vmatprep.subr.bf16.mxu0 %v1627_v60 }
 0x104   : > { %1536 = vmatprep.subr.bf16.mxu1 %v1535_v62  ;;  %v935_v62 = vld [vmem:[#allocation7 + $0x190] sm:$0xff] }
 0x105   : > { %v1629_v0 = vpack.c.bf16 %v935_v62, %v933_v61 }
 0x107   : > { %1538 = vmatpush1.bf16.msra.mxu1 %v1537_v3  ;;  %v629_v3 = vld [vmem:[#allocation5 + $0x6d0] sm:$0xff]  ;;  %1630 = vmatpush1.bf16.msra.mxu0 %v1629_v0 }
 0x108   : > { %1540 = vmatprep.subr.bf16.mxu1 %v1539_v7  ;;  %v633_v7 = vld [vmem:[#allocation5 + $0x6f0] sm:$0xff]  ;;  %1632 = vmatprep.subr.bf16.mxu0 %v1631_v8 }
 0x109   : > { %v1561_v15 = vpack.c.bf16 %v633_v7, %v629_v3 }
 0x10b   : > { %1542 = vmatpush1.bf16.msra.mxu1 %v1541_v16  ;;  %v637_v16 = vld [vmem:[#allocation5 + $0x710] sm:$0xff]  ;;  %1634 = vmatpush1.bf16.msra.mxu0 %v1633_v14 }
 0x10c   : > { %1544 = vmatprep.subr.bf16.mxu1 %v1543_v21  ;;  %v641_v21 = vld [vmem:[#allocation5 + $0x730] sm:$0xff]  ;;  %1636 = vmatprep.subr.bf16.mxu0 %v1635_v22 }
 0x10d   : > { %v1565_v28 = vpack.c.bf16 %v641_v21, %v637_v16  ;;  %v956_v16 = vld [vmem:[#allocation7 + $0x238] sm:$0xff]  ;;  %v1645_v21 = vpack.c.bf16 %v951_v13, %v949_v12  ;;  %v987_v12 = vld [vmem:[#allocation7 + $0x330] sm:$0xff] }
 0x10f   : > { %1546 = vmatpush1.bf16.msra.mxu1 %v1545_v29  ;;  %v645_v29 = vld [vmem:[#allocation5 + $0x750] sm:$0xff]  ;;  %1638 = vmatpush1.bf16.msra.mxu0 %v1637_v27 }
 0x110   : > { %1548 = vmatprep.subr.bf16.mxu1 %v1547_v33  ;;  %v649_v33 = vld [vmem:[#allocation5 + $0x770] sm:$0xff]  ;;  %1640 = vmatprep.subr.bf16.mxu0 %v1639_v34  ;;  %v957_v34 = vld [vmem:[#allocation7 + $0x240] sm:$0xff] }
 0x111   : > { %v1569_v41 = vpack.c.bf16 %v649_v33, %v645_v29  ;;  %v960_v29 = vld [vmem:[#allocation7 + $0x258] sm:$0xff] }
 0x113   : > { %1550 = vmatpush1.bf16.msra.mxu1 %v1549_v42  ;;  %1642 = vmatpush1.bf16.msra.mxu0 %v1641_v40  ;;  %v1571_v42 = vpack.c.bf16 %v658_v39, %v654_v37  ;;  %v964_v37 = vld [vmem:[#allocation7 + $0x278] sm:$0xff]  ;;  %v1653_v39 = vpack.c.bf16 %v959_v35, %v957_v34  ;;  %v997_v34 = vld [vmem:[#allocation7 + $0x380] sm:$0xff]  ;;  %v999_v35 = vld [vmem:[#allocation7 + $0x390] sm:$0xff] }
 0x114   : > { %1552 = vmatprep.subr.bf16.mxu1 %v1551_v46  ;;  %v666_v46 = vld [vmem:[#allocation5 + $0x7f8] sm:$0xff]  ;;  %v1655_v40 = vpack.c.bf16 %v964_v37, %v962_v36  ;;  %v1002_v36 = vld [vmem:[#allocation7 + $0x3a8] sm:$0xff] }
 0x115   : > { %v1575_v48 = vpack.c.bf16 %v666_v46, %v662_v45  ;;  %v1659_v46 = vpack.c.bf16 %v968_v44, %v966_v43  ;;  %v1004_v37 = vld [vmem:[#allocation7 + $0x3b8] sm:$0xff]  ;;  %v1006_v43 = vld [vmem:[#allocation7 + $0x3c8] sm:$0xff] }
 0x116   : > { %v1008_v44 = vld [vmem:[#allocation7 + $0x3d8] sm:$0xff] }
 0x117   : > { %1554 = vmatpush1.bf16.msra.mxu1 %v1553_v54  ;;  %v1643_v54 = vpack.c.bf16 %v952_v53, %v950_v52  ;;  %v1663_v52 = vpack.c.bf16 %v972_v50, %v970_v49  ;;  %v969_v53 = vld [vmem:[#allocation7 + $0x2a0] sm:$0xff]  ;;  %v1010_v49 = vld [vmem:[#allocation7 + $0x3e8] sm:$0xff]  ;;  %v1012_v50 = vld [vmem:[#allocation7 + $0x3f8] sm:$0xff] }
 0x118   : > { %1556 = vmatprep.subr.bf16.mxu1 %v1555_v58 }
 0x119   : > { %1644 = vmatprep.subr.bf16.mxu0 %v1643_v54  ;;  %v971_v54 = vld [vmem:[#allocation7 + $0x2b0] sm:$0xff] }
 0x11b   : > { %1558 = vmatpush1.bf16.msra.mxu1 %v1557_v1 }
 0x11c   : > { %1560 = vmatprep.subr.bf16.mxu1 %v1559_v6 }
 0x11f   : > { %1562 = vmatpush1.bf16.msra.mxu1 %v1561_v15  ;;  %v954_v15 = vld [vmem:[#allocation7 + $0x228] sm:$0xff] }
 0x120   : > { %1564 = vmatprep.subr.bf16.mxu1 %v1563_v20  ;;  %v1647_v24 = vpack.c.bf16 %v956_v16, %v954_v15  ;;  %v992_v15 = vld [vmem:[#allocation7 + $0x358] sm:$0xff] }
 0x123   : > { %1566 = vmatpush1.bf16.msra.mxu1 %v1565_v28  ;;  %v958_v28 = vld [vmem:[#allocation7 + $0x248] sm:$0xff] }
 0x124   : > { %1568 = vmatprep.subr.bf16.mxu1 %v1567_v32  ;;  %v1649_v32 = vpack.c.bf16 %v955_v26, %v953_v25  ;;  %v1651_v33 = vpack.c.bf16 %v960_v29, %v958_v28  ;;  %v993_v28 = vld [vmem:[#allocation7 + $0x360] sm:$0xff]  ;;  %v995_v29 = vld [vmem:[#allocation7 + $0x370] sm:$0xff] }
 0x127   : > { %1570 = vmatpush1.bf16.msra.mxu1 %v1569_v41  ;;  %v961_v41 = vld [vmem:[#allocation7 + $0x260] sm:$0xff] }
 0x128   : > { %1572 = vmatprep.subr.bf16.mxu1 %v1571_v42  ;;  %v963_v42 = vld [vmem:[#allocation7 + $0x270] sm:$0xff] }
 0x129   : > { %v1657_v45 = vpack.c.bf16 %v963_v42, %v961_v41  ;;  %v1001_v41 = vld [vmem:[#allocation7 + $0x3a0] sm:$0xff]  ;;  %v1003_v42 = vld [vmem:[#allocation7 + $0x3b0] sm:$0xff] }
 0x12b   : > { %1574 = vmatpush1.bf16.msra.mxu1 %v1573_v47  ;;  %v965_v47 = vld [vmem:[#allocation7 + $0x280] sm:$0xff] }
 0x12c   : > { %1576 = vmatprep.subr.bf16.mxu1 %v1575_v48  ;;  %v967_v48 = vld [vmem:[#allocation7 + $0x290] sm:$0xff] }
 0x12f   : > { %1578 = vmatpush1.bf16.msra.mxu1 %v1577_v51  ;;  %v1661_v51 = vpack.c.bf16 %v967_v48, %v965_v47  ;;  %v1005_v47 = vld [vmem:[#allocation7 + $0x3c0] sm:$0xff]  ;;  %v1007_v48 = vld [vmem:[#allocation7 + $0x3d0] sm:$0xff] }
 0x132   : > { %809 = vmatmul.mubr.f32.vlgmr.msra.gmra.mrb[8].mxu1 %v2252_v2 }
 0x133   : > { %814 = vmatprep.mubr.f32.mxu1 %v2255_v9 }
 0x136   : > { %815 = vmatmul.mubr.f32.gmra.mrb[10].mxu1 %v2260_v17 }
 0x185   : > { %v450_v55 = vpop.f32.mrb[0].mxu1 }
 0x186   : > { %v1305_v56 = vmul.f32 -1.442695, %v450_v55  ;;  %v452_v57 = vpop.f32.mrb[1].mxu1 }
 0x187   : > { %v1306_v58 = vmul.f32 -1.442695, %v452_v57 }
 0x188   : > { %1800 = vpow2.f32 %v1305_v56  ;;  %v976_v56 = vld [vmem:[#allocation7 + $0x2d8] sm:$0xff] }
 0x189   : > { %1802 = vpow2.f32 %v1306_v58  ;;  %v456_v59 = vpop.f32.mrb[2].mxu1 }
 0x18a   : > { %v1309_v60 = vmul.f32 -1.442695, %v456_v59  ;;  %v458_v61 = vpop.f32.mrb[3].mxu1 }
 0x18b   : > { %v1310_v62 = vmul.f32 -1.442695, %v458_v61 }
 0x18c   : > { %1804 = vpow2.f32 %v1309_v60  ;;  %v975_v60 = vld [vmem:[#allocation7 + $0x2d0] sm:$0xff] }
 0x18d   : > { %1806 = vpow2.f32 %v1310_v62  ;;  %v980_v62 = vld [vmem:[#allocation7 + $0x2f8] sm:$0xff] }
 0x18e   : > { %v733_v2 = vpop.f32.mrb[0].mxu0 }
 0x18f   : > { %v735_v9 = vpop.f32.mrb[1].mxu0 }
 0x192   : > { %v1801_v63 = vpop.eup %1800  ;;  %v739_v0 = vpop.f32.mrb[2].mxu0 }
 0x193   : > { %v1803_v17 = vpop.eup %1802  ;;  %v845_v38 = vadd.f32 1.0, %v1801_v63  ;;  %v741_v3 = vpop.f32.mrb[3].mxu0  ;;  %v977_v63 = vld [vmem:[#allocation7 + $0x2e0] sm:$0xff] }
 0x194   : > { %v846_v1 = vadd.f32 1.0, %v1803_v17  ;;  %v979_v17 = vld [vmem:[#allocation7 + $0x2f0] sm:$0xff] }
 0x195   : > { %1808 = vrcp.f32 %v845_v38  ;;  %v982_v38 = vld [vmem:[#allocation7 + $0x308] sm:$0xff] }
 0x196   : > { %v1805_v4 = vpop.eup %1804  ;;  %1810 = vrcp.f32 %v846_v1  ;;  %v1673_v1 = vpack.c.bf16 %v979_v17, %v977_v63 }
 0x197   : > { %v1807_v5 = vpop.eup %1806  ;;  %v849_v6 = vadd.f32 1.0, %v1805_v4  ;;  %v981_v4 = vld [vmem:[#allocation7 + $0x300] sm:$0xff] }
 0x198   : > { %v850_v7 = vadd.f32 1.0, %v1807_v5  ;;  %v983_v5 = vld [vmem:[#allocation7 + $0x310] sm:$0xff] }
 0x199   : > { %1812 = vrcp.f32 %v849_v6  ;;  %v986_v6 = vld [vmem:[#allocation7 + $0x328] sm:$0xff] }
 0x19a   : > { %1814 = vrcp.f32 %v850_v7  ;;  %v988_v7 = vld [vmem:[#allocation7 + $0x338] sm:$0xff] }
 0x19f   : > { %v1809_v8 = vpop.eup %1808 }
 0x1a0   : > { %v1811_v10 = vpop.eup %1810  ;;  %v869_v11 = vmul.f32 %v1809_v8, %v450_v55  ;;  %v974_v55 = vld [vmem:[#allocation7 + $0x2c8] sm:$0xff]  ;;  %v1677_v8 = vpack.c.bf16 %v983_v5, %v981_v4 }
 0x1a1   : > { %v870_v14 = vmul.f32 %v1811_v10, %v452_v57  ;;  %v1665_v57 = vpack.c.bf16 %v971_v54, %v969_v53  ;;  %v1667_v58 = vpack.c.bf16 %v976_v56, %v974_v55  ;;  %v1679_v10 = vpack.c.bf16 %v988_v7, %v986_v6  ;;  %v1009_v53 = vld [vmem:[#allocation7 + $0x3e0] sm:$0xff]  ;;  %v1011_v54 = vld [vmem:[#allocation7 + $0x3f0] sm:$0xff] }
 0x1a2   : > { %v877_v18 = vmul.f32 %v869_v11, %v733_v2  ;;  %v985_v11 = vld [vmem:[#allocation7 + $0x320] sm:$0xff]  ;;  %v1705_v55 = vpack.c.bf16 %v1011_v54, %v1009_v53 }
 0x1a3   : > { %v1813_v19 = vpop.eup %1812  ;;  %v878_v20 = vmul.f32 %v870_v14, %v735_v9  ;;  %v990_v14 = vld [vmem:[#allocation7 + $0x348] sm:$0xff] }
 0x1a4   : > { %v1815_v22 = vpop.eup %1814  ;;  %v873_v23 = vmul.f32 %v1813_v19, %v456_v59  ;;  %v973_v59 = vld [vmem:[#allocation7 + $0x2c0] sm:$0xff]  ;;  %v1683_v19 = vpack.c.bf16 %v992_v15, %v990_v14 }
 0x1a5   : > { %1077 = vmatprep.mubr.f32.mxu0 %v878_v20  ;;  %v874_v27 = vmul.f32 %v1815_v22, %v458_v61  ;;  %v978_v61 = vld [vmem:[#allocation7 + $0x2e8] sm:$0xff]  ;;  %v1669_v2 = vpack.c.bf16 %v975_v60, %v973_v59  ;;  %v989_v20 = vld [vmem:[#allocation7 + $0x340] sm:$0xff] }
 0x1a6   : > { %1078 = vmatmul.mubr.f32.vlgmr.msra.gmra.mrb[4].mxu0 %v877_v18  ;;  %v881_v30 = vmul.f32 %v873_v23, %v739_v0  ;;  %v1671_v9 = vpack.c.bf16 %v980_v62, %v978_v61  ;;  %v984_v0 = vld [vmem:[#allocation7 + $0x318] sm:$0xff]  ;;  %v1681_v18 = vpack.c.bf16 %v987_v12, %v985_v11  ;;  %v994_v23 = vld [vmem:[#allocation7 + $0x368] sm:$0xff] }
 0x1a7   : > { %v882_v31 = vmul.f32 %v874_v27, %v741_v3  ;;  %1646 = vmatpush1.bf16.msra.mxu0 %v1645_v21  ;;  %v1675_v3 = vpack.c.bf16 %v984_v0, %v982_v38  ;;  %v991_v21 = vld [vmem:[#allocation7 + $0x350] sm:$0xff] }
 0x1a8   : > { %1648 = vmatprep.subr.bf16.mxu0 %v1647_v24  ;;  %v996_v24 = vld [vmem:[#allocation7 + $0x378] sm:$0xff]  ;;  %v1685_v26 = vpack.c.bf16 %v991_v21, %v989_v20 }
 0x1a9   : > { %1083 = vmatprep.mubr.f32.mxu0 %v882_v31  ;;  %v1687_v27 = vpack.c.bf16 %v996_v24, %v994_v23  ;;  %v1000_v31 = vld [vmem:[#allocation7 + $0x398] sm:$0xff] }
 0x1aa   : > { %1084 = vmatmul.mubr.f32.gmra.mrb[6].mxu0 %v881_v30  ;;  %v998_v30 = vld [vmem:[#allocation7 + $0x388] sm:$0xff] }
 0x1ab   : > { %1650 = vmatpush1.bf16.msra.mxu0 %v1649_v32  ;;  %v1689_v32 = vpack.c.bf16 %v995_v29, %v993_v28 }
 0x1ac   : > { %1652 = vmatprep.subr.bf16.mxu0 %v1651_v33  ;;  %v1691_v33 = vpack.c.bf16 %v1000_v31, %v998_v30 }
 0x1af   : > { %1654 = vmatpush1.bf16.msra.mxu0 %v1653_v39  ;;  %v1693_v39 = vpack.c.bf16 %v999_v35, %v997_v34 }
 0x1b0   : > { %1656 = vmatprep.subr.bf16.mxu0 %v1655_v40  ;;  %v1695_v40 = vpack.c.bf16 %v1004_v37, %v1002_v36 }
 0x1b3   : > { %1658 = vmatpush1.bf16.msra.mxu0 %v1657_v45  ;;  %v1697_v45 = vpack.c.bf16 %v1003_v42, %v1001_v41 }
 0x1b4   : > { %1660 = vmatprep.subr.bf16.mxu0 %v1659_v46  ;;  %v1699_v46 = vpack.c.bf16 %v1008_v44, %v1006_v43 }
 0x1b7   : > { %1662 = vmatpush1.bf16.msra.mxu0 %v1661_v51  ;;  %v1701_v51 = vpack.c.bf16 %v1007_v48, %v1005_v47 }
 0x1b8   : > { %1664 = vmatprep.subr.bf16.mxu0 %v1663_v52  ;;  %v1703_v52 = vpack.c.bf16 %v1012_v50, %v1010_v49 }
 0x1bb   : > { %1666 = vmatpush1.bf16.msra.mxu0 %v1665_v57 }
 0x1bc   : > { %1668 = vmatprep.subr.bf16.mxu0 %v1667_v58 }
 0x1bf   : > { %1670 = vmatpush1.bf16.msra.mxu0 %v1669_v2 }
 0x1c0   : > { %1672 = vmatprep.subr.bf16.mxu0 %v1671_v9 }
 0x1c3   : > { %1674 = vmatpush1.bf16.msra.mxu0 %v1673_v1 }
 0x1c4   : > { %1676 = vmatprep.subr.bf16.mxu0 %v1675_v3 }
 0x1c5   : > { %v2274_v13 = vpop.f32.mrb[4].mxu1 }
 0x1c6   : > { %v2276_v16 = vpop.f32.mrb[5].mxu1  ;;  %v1307_v56 = vmul.f32 -1.442695, %v2274_v13 }
 0x1c7   : > { %1678 = vmatpush1.bf16.msra.mxu0 %v1677_v8  ;;  %v1308_v57 = vmul.f32 -1.442695, %v2276_v16 }
 0x1c8   : > { %1680 = vmatprep.subr.bf16.mxu0 %v1679_v10  ;;  %1816 = vpow2.f32 %v1307_v56 }
 0x1c9   : > { %v2278_v22 = vpop.f32.mrb[6].mxu1  ;;  %1818 = vpow2.f32 %v1308_v57 }
 0x1ca   : > { %v2280_v25 = vpop.f32.mrb[7].mxu1  ;;  %v1311_v58 = vmul.f32 -1.442695, %v2278_v22 }
 0x1cb   : > { %1682 = vmatpush1.bf16.msra.mxu0 %v1681_v18  ;;  %v1312_v59 = vmul.f32 -1.442695, %v2280_v25 }
 0x1cc   : > { %1684 = vmatprep.subr.bf16.mxu0 %v1683_v19  ;;  %1820 = vpow2.f32 %v1311_v58 }
 0x1cd   : > { %1822 = vpow2.f32 %v1312_v59 }
 0x1cf   : > { %1686 = vmatpush1.bf16.msra.mxu0 %v1685_v26 }
 0x1d0   : > { %1688 = vmatprep.subr.bf16.mxu0 %v1687_v27 }
 0x1d2   : > { %v1817_v60 = vpop.eup %1816 }
 0x1d3   : > { %1690 = vmatpush1.bf16.msra.mxu0 %v1689_v32  ;;  %v1819_v61 = vpop.eup %1818  ;;  %v847_v62 = vadd.f32 1.0, %v1817_v60 }
 0x1d4   : > { %1692 = vmatprep.subr.bf16.mxu0 %v1691_v33  ;;  %v848_v9 = vadd.f32 1.0, %v1819_v61 }
 0x1d5   : > { %1824 = vrcp.f32 %v847_v62 }
 0x1d6   : > { %v1821_v2 = vpop.eup %1820  ;;  %1826 = vrcp.f32 %v848_v9 }
 0x1d7   : > { %1694 = vmatpush1.bf16.msra.mxu0 %v1693_v39  ;;  %v1823_v63 = vpop.eup %1822  ;;  %v851_v17 = vadd.f32 1.0, %v1821_v2 }
 0x1d8   : > { %1696 = vmatprep.subr.bf16.mxu0 %v1695_v40  ;;  %v852_v38 = vadd.f32 1.0, %v1823_v63 }
 0x1d9   : > { %1828 = vrcp.f32 %v851_v17 }
 0x1da   : > { %1830 = vrcp.f32 %v852_v38 }
 0x1db   : > { %1698 = vmatpush1.bf16.msra.mxu0 %v1697_v45 }
 0x1dc   : > { %1700 = vmatprep.subr.bf16.mxu0 %v1699_v46 }
 0x1df   : > { %1702 = vmatpush1.bf16.msra.mxu0 %v1701_v51  ;;  %v1825_v0 = vpop.eup %1824 }
 0x1e0   : > { %1704 = vmatprep.subr.bf16.mxu0 %v1703_v52  ;;  %v1827_v1 = vpop.eup %1826  ;;  %v871_v3 = vmul.f32 %v1825_v0, %v2274_v13 }
 0x1e1   : > { %v872_v5 = vmul.f32 %v1827_v1, %v2276_v16 }
 0x1e3   : > { %1706 = vmatpush1.bf16.msra.mxu0 %v1705_v55  ;;  %v1829_v4 = vpop.eup %1828 }
 0x1e4   : > { %v1831_v7 = vpop.eup %1830  ;;  %v875_v12 = vmul.f32 %v1829_v4, %v2278_v22 }
 0x1e5   : > { %v876_v14 = vmul.f32 %v1831_v7, %v2280_v25 }
 0x205   : > { %v810_v6 = vpop.f32.mrb[8].mxu1 }
 0x206   : > { %v879_v8 = vmul.f32 %v871_v3, %v810_v6  ;;  %v812_v10 = vpop.f32.mrb[9].mxu1 }
 0x207   : > { %v880_v11 = vmul.f32 %v872_v5, %v812_v10 }
 0x209   : > { %v816_v15 = vpop.f32.mrb[10].mxu1  ;;  %1154 = vmatprep.mubr.f32.mxu0 %v880_v11 }
 0x20a   : > { %v883_v18 = vmul.f32 %v875_v12, %v816_v15  ;;  %v818_v19 = vpop.f32.mrb[11].mxu1  ;;  %1155 = vmatmul.mubr.f32.vlgmr.msra.gmra.mrb[4].mxu0 %v879_v8 }
 0x20b   : > { %v884_v13 = vmul.f32 %v876_v14, %v818_v19 }
 0x20d   : > { %1160 = vmatprep.mubr.f32.mxu0 %v884_v13 }
 0x20e   : > { %1161 = vmatmul.mubr.f32.gmra.mrb[6].mxu0 %v883_v18 }
 0x2dd   : > { %v1156_v16 = vpop.f32.mrb[4].mxu0 }
 0x2de   : > { %1167 = vst [vmem:[%s247_s20] sm:$0xff] %v1156_v16  ;;  %v1158_v20 = vpop.f32.mrb[5].mxu0 }
 0x2df   : > { %1168 = vst [vmem:[%s247_s20 + $0x8] sm:$0xff] %v1158_v20 }
 0x2e1   : > { %v1162_v21 = vpop.f32.mrb[6].mxu0 }
 0x2e2   : > { %1169 = vst [vmem:[%s247_s20 + $0x10] sm:$0xff] %v1162_v21  ;;  %v1164_v22 = vpop.f32.mrb[7].mxu0 }
 0x2e3   : > { %1170 = vst [vmem:[%s247_s20 + $0x18] sm:$0xff] %v1164_v22 }
 0x2e4   : > { %1931 = shalt.err (!%p1928_p11)
}
 0x2e5   : > { %s1932_s21 = scalar_lea.hbm %s2298_s8, 512  ;;  %s1936_s4 = scalar_lea.hbm %s2350_s3, 1024 }
 0x2e6   : > { %p1933_p0 = scmp.ne.s32.totalorder %s2298_s8, %s1932_s21  ;;  %p1937_p6 = scmp.lt.u32.totalorder %s2298_s8, %s2350_s3 }
 0x2e7   : > { %p1938_p7 = scmp.lt.u32.totalorder %s1936_s4, %s1932_s21  ;;  %p1940_p8 = scmp.lt.u32.totalorder %s1932_s21, %s2298_s8 }
 0x2e8   : > { %p1934_p4 = pnand %p1933_p0, %p2365_p12 }
 0x2e9   : > { %p1939_p2 = por %p1938_p7, %p1937_p6 }
 0x2ea   : > { %p1935_p13 = pneg %p1934_p4 }
 0x2eb   : > { %p1941_p1 = por %p1940_p8, %p1939_p2 }
 0x2ed   : > { %p1942_p10 = pnand %p1941_p1, %p1935_p13 }
 0x2ef   : > { %1945 = shalt.err (!%p1942_p10)
}
 0x2f0   : > { %s2014_s20 = smov 256   ;;  %s2015_s24 = smov 16  }
 0x2f1   : > { %1721 = dma.vmem_to_hbm [thread:$0]  (%p2365_p12), %s2293_s22, 512, %s2298_s8, %s1172_s26, %s2014_s20, %s2014_s20, %s2015_s24  }
 0x2f2 PF: > { %s1201_s9 = sand.u32 1, %s1984_s12   ;;  %p2366_p3 = scmp.ne.s32.totalorder %s2358_s23, 0 }
 0x2f3   : > { %p2367_p5 = scmp.ge.s32.totalorder %s2004_s17, 2  ;;  %s1202_s10 = scalar_lea.sflag [#allocation4], %s1201_s9 }
 0x2f5   : > { %p1735_p9 = pnand %p2367_p5, %p2366_p3 }
 0x2f7   : > { %1979 = dma.done.wait (!%p1735_p9), %s1202_s10, 512  }
 0x2f8   : > { %1981 = vsyncadd (!%p1735_p9), %s1202_s10, 4294966784  ;;  %s20_s17 = sadd.s32 1, %s2004_s17   ;;  %s2368_s12 = smov %s1988_s13 }
 0x2f9   : > { %p17_p11 = scmp.ge.s32.totalorder %s20_s17, 4   ;;  %s2369_s13 = smov %s1992_s14 }
 0x2fa   : > { %s2370_s14 = smov %s2181_s5  ;;  %s2371_s15 = smov %s2000_s16 }
 0x2fb   : > { %s2372_s16 = smov %s2374_s19  ;;  %19 = sbr.rel (!%p17_p11) target bundleno = 7 (0x7), region = 88 }
 0x302   :  { %1207 = vsyncpa [#allocation3], 1 }
 0x303   :  { %1209 = vsyncpa [#allocation3 + $0x1], 1 }
 0x304   :  { %1210 = vsyncpa [#allocation6], 1 }
 0x305   :  { %1211 = vsyncpa [#allocation4], 1 }
 0x306   :  { %1213 = vsyncpa [#allocation4 + $0x1], 1 }

</bundles_post_ra>
